<compile_context>
chip_gen: v5e
topology: v5e:2x2
jax: 0.10.0
libtpu: 0.0.40
codegen_flags: <defaults>
</compile_context>

<pallas_src>
import math

import jax
import jax.numpy as jnp
from jax.experimental import pallas as pl
from jax.experimental.pallas import tpu as pltpu

HIDDEN = 256  # hidden width is fixed at 256 inside Critic


# ---------------------------------------------------------------------------
# Pallas kernel: both critics, all branches, command select — one invocation.
# ---------------------------------------------------------------------------
def _twin_critic_kernel(emb_ref, act_ref, cmd_ref,
                        w1e_ref, w1a_ref, b1_ref,
                        w2_ref, b2_ref, w3_ref, b3_ref,
                        wo_ref, bo_ref,
                        q1_ref, q2_ref):
    bf = jnp.bfloat16
    B = emb_ref.shape[0]

    x_emb = emb_ref[...].astype(bf)                       # (B, E)   bf16
    x_act = act_ref[...].astype(bf)                       # (B, 2)   bf16
    cmd = cmd_ref[...]                                    # (B, 1)   int32

    # fc1 for BOTH critics, split by input source (replaces wrapper concat):
    # (B,E)@(E,512) + (B,2)@(2,512) + b1 -> (B, 512) f32
    h1 = (jnp.dot(x_emb, w1e_ref[...], preferred_element_type=jnp.float32)
          + jnp.dot(x_act, w1a_ref[...], preferred_element_type=jnp.float32)
          + b1_ref[...])
    h1 = jnp.maximum(h1, 0.0)                             # (B, 512) f32

    out_refs = (q1_ref, q2_ref)
    for c in range(2):                                    # static unroll: 2 critics
        hc = h1[:, c * HIDDEN:(c + 1) * HIDDEN].astype(bf)   # (B, 256) bf16

        h2 = jnp.dot(hc, w2_ref[c], preferred_element_type=jnp.float32) + b2_ref[c]
        h2 = jnp.maximum(h2, 0.0).astype(bf)              # (B, 256) bf16

        # all three branch fc3 layers fused: (B,256)@(256,768)
        h3 = jnp.dot(h2, w3_ref[c], preferred_element_type=jnp.float32) + b3_ref[c]
        h3 = jnp.maximum(h3, 0.0)                         # (B, 768) f32

        # per-branch heads on the VPU/XLU (slices at 0/256/512 are 128-lane
        # aligned) fused with the in-kernel command select:
        #   q = sum_i [cmd == i] * (h3_i . wo_i + bo_i)
        wo_c = wo_ref[c]                                  # (3, 256) f32
        bo_c = bo_ref[c]                                  # (3, 1)   f32
        q = jnp.zeros((B, 1), jnp.float32)
        for i in range(3):                                # (left, straight, right)
            hb = h3[:, i * HIDDEN:(i + 1) * HIDDEN]       # (B, 256) f32
            qi = (jnp.sum(hb * wo_c[i:i + 1, :], axis=-1, keepdims=True)
                  + bo_c[i:i + 1, :])                     # (B, 1)
            mask = (cmd == i).astype(jnp.float32)         # (B, 1)
            q = q + mask * qi
        out_refs[c][...] = q                              # (B, 1) f32


# ---------------------------------------------------------------------------
# Wrapper: one pallas_call, no extra XLA ops around it.
# ---------------------------------------------------------------------------
def twin_critic_forward(emb, command, action, kernel_params):
    """kernel_params = (W1e, W1a, b1, W2, b2, W3, b3, Wo, bo)."""
    W1e, W1a, b1, W2, b2, W3, b3, Wo, bo = kernel_params
    B, E = emb.shape

    cmd = command.reshape(B, 1).astype(jnp.int32)
    args = (emb, action, cmd, W1e, W1a, b1, W2, b2, W3, b3, Wo, bo)

    # advisory cost hint (kernel is weight-DMA / fixed-overhead bound)
    flops = (2 * B * (E + 2) * 2 * HIDDEN                       # fc1 (both critics)
             + 2 * (2 * B * HIDDEN * HIDDEN)                    # fc2
             + 2 * (2 * B * HIDDEN * 3 * HIDDEN)                # fc3 (3 branches fused)
             + 2 * (3 * 2 * B * HIDDEN))                        # heads
    bytes_accessed = (sum(int(a.size) * a.dtype.itemsize for a in args)
                      + 2 * B * 4)                              # + two (B,1) f32 outputs

    vmem = lambda: pl.BlockSpec(memory_space=pltpu.MemorySpace.VMEM)

    q1, q2 = pl.pallas_call(
        _twin_critic_kernel,
        out_shape=(jax.ShapeDtypeStruct((B, 1), jnp.float32),
                   jax.ShapeDtypeStruct((B, 1), jnp.float32)),
        in_specs=[vmem() for _ in args],
        out_specs=(vmem(), vmem()),
        cost_estimate=pl.CostEstimate(flops=int(flops), transcendentals=0,
                                      bytes_accessed=int(bytes_accessed)),
    )(*args)
    return q1, q2


# ---------------------------------------------------------------------------
# Parameter init (PyTorch nn.Linear-style uniform bounds), raw layout
# ---------------------------------------------------------------------------
def _linear(kw, kb, fan_in, fan_out):
    bound = 1.0 / math.sqrt(fan_in)
    W = jax.random.uniform(kw, (fan_in, fan_out), jnp.float32, -bound, bound)
    b = jax.random.uniform(kb, (1, fan_out), jnp.float32, -bound, bound)
    return W, b


def init_critic_params(key, emb_size):
    in1 = emb_size + 2
    ks = jax.random.split(key, 16)
    p = {}
    p["W1"], p["b1"] = _linear(ks[0], ks[1], in1, HIDDEN)
    p["W2"], p["b2"] = _linear(ks[2], ks[3], HIDDEN, HIDDEN)
    p["W3_left"], p["b3_left"] = _linear(ks[4], ks[5], HIDDEN, HIDDEN)
    p["Wo_left"], p["bo_left"] = _linear(ks[6], ks[7], HIDDEN, 1)
    p["W3_straight"], p["b3_straight"] = _linear(ks[8], ks[9], HIDDEN, HIDDEN)
    p["Wo_straight"], p["bo_straight"] = _linear(ks[10], ks[11], HIDDEN, 1)
    p["W3_right"], p["b3_right"] = _linear(ks[12], ks[13], HIDDEN, HIDDEN)
    p["Wo_right"], p["bo_right"] = _linear(ks[14], ks[15], HIDDEN, 1)
    return p


# ---------------------------------------------------------------------------
# Fuse / re-layout / quantize raw params into the kernel layout.
# ---------------------------------------------------------------------------
def prepare_kernel_params(c1, c2):
    bf = jnp.bfloat16
    branch_order = ("left", "straight", "right")   # == torch.stack order
    E = c1["W1"].shape[0] - 2                      # emb features (rows of W1 before action)

    # fc1 fused across critics, then split by input source (emb rows / action rows)
    W1cat = jnp.concatenate([c1["W1"], c2["W1"]], axis=1)          # (E+2, 512)
    W1e = W1cat[:E].astype(bf)                                     # (E, 512)  bf16
    W1a = W1cat[E:].astype(bf)                                     # (2, 512)  bf16
    b1 = jnp.concatenate([c1["b1"], c2["b1"]], axis=1)             # (1, 512)  f32

    W2 = jnp.stack([c1["W2"], c2["W2"]]).astype(bf)                # (2, 256, 256)
    b2 = jnp.stack([c1["b2"], c2["b2"]])                           # (2, 1, 256) f32

    def fuse_branches(c):
        W3 = jnp.concatenate([c["W3_" + n] for n in branch_order], axis=1)   # (256, 768)
        b3 = jnp.concatenate([c["b3_" + n] for n in branch_order], axis=1)   # (1, 768)
        Wo = jnp.stack([c["Wo_" + n][:, 0] for n in branch_order])           # (3, 256)
        bo = jnp.stack([c["bo_" + n][0] for n in branch_order])              # (3, 1)
        return W3, b3, Wo, bo

    W3a, b3a, Woa, boa = fuse_branches(c1)
    W3b, b3b, Wob, bob = fuse_branches(c2)

    W3 = jnp.stack([W3a, W3b]).astype(bf)                          # (2, 256, 768)
    b3 = jnp.stack([b3a, b3b])                                     # (2, 1, 768) f32
    Wo = jnp.stack([Woa, Wob])                                     # (2, 3, 256) f32 (tiny; keep f32)
    bo = jnp.stack([boa, bob])                                     # (2, 3, 1)   f32

    return (W1e, W1a, b1, W2, b2, W3, b3, Wo, bo)


# ---------------------------------------------------------------------------
# Pure-JAX reference mirroring the PyTorch forward (same bf16 cast points as
# the kernel; the small output heads stay f32 in both).
# ---------------------------------------------------------------------------
def _critic_ref(x, cmd, p):
    bf, f32 = jnp.bfloat16, jnp.float32

    def lin_bf(h, W, b):
        return jnp.dot(h.astype(bf), W.astype(bf), preferred_element_type=f32) + b

    h = jax.nn.relu(lin_bf(x, p["W1"], p["b1"]))
    h = jax.nn.relu(lin_bf(h, p["W2"], p["b2"]))
    qs = []
    for n in ("left", "straight", "right"):
        hb = jax.nn.relu(lin_bf(h, p["W3_" + n], p["b3_" + n]))
        qs.append(jnp.dot(hb, p["Wo_" + n]) + p["bo_" + n])        # f32 head
    stacked = jnp.stack(qs, axis=0)                                # (3, B, 1)
    idx = cmd.reshape(1, -1, 1).astype(jnp.int32)
    return jnp.take_along_axis(stacked, idx, axis=0)[0]            # (B, 1)


if __name__ == "__main__":
    emb_size = 32   # small but consistent: fc1 takes emb_size + 2 features
    B = 8

    key = jax.random.PRNGKey(0)
    kp1, kp2, ke, ka, kc = jax.random.split(key, 5)

    critic1_raw = init_critic_params(kp1, emb_size)
    critic2_raw = init_critic_params(kp2, emb_size)
    kparams = prepare_kernel_params(critic1_raw, critic2_raw)

    emb = jax.random.normal(ke, (B, emb_size), jnp.float32)
    action = jax.random.normal(ka, (B, 2), jnp.float32)
    command = jax.random.randint(kc, (B,), 0, 3, jnp.int32)

    q1, q2 = jax.jit(twin_critic_forward)(emb, command, action, kparams)
    jax.block_until_ready((q1, q2))

    # correctness check against a pure-JAX reference structured like the
    # original PyTorch module (separate branch weights + gather)
    x = jnp.concatenate([emb, action], axis=1)
    r1 = _critic_ref(x, command, critic1_raw)
    r2 = _critic_ref(x, command, critic2_raw)

    assert q1.shape == (B, 1) and q2.shape == (B, 1)
    assert jnp.allclose(q1, r1, atol=2e-3, rtol=2e-3), float(jnp.max(jnp.abs(q1 - r1)))
    assert jnp.allclose(q2, r2, atol=2e-3, rtol=2e-3), float(jnp.max(jnp.abs(q2 - r2)))

    print("KERNEL_OK")
</pallas_src>

<mosaic_0001>
module attributes {stable_mosaic.version = 11 : i64} {
  func.func @_twin_critic_kernel(%arg0: memref<8x32xf32, #tpu.memory_space<vmem>>, %arg1: memref<8x2xf32, #tpu.memory_space<vmem>>, %arg2: memref<8x1xi32, #tpu.memory_space<vmem>>, %arg3: memref<32x512xbf16, #tpu.memory_space<vmem>>, %arg4: memref<2x512xbf16, #tpu.memory_space<vmem>>, %arg5: memref<1x512xf32, #tpu.memory_space<vmem>>, %arg6: memref<2x256x256xbf16, #tpu.memory_space<vmem>>, %arg7: memref<2x1x256xf32, #tpu.memory_space<vmem>>, %arg8: memref<2x256x768xbf16, #tpu.memory_space<vmem>>, %arg9: memref<2x1x768xf32, #tpu.memory_space<vmem>>, %arg10: memref<2x3x256xf32, #tpu.memory_space<vmem>>, %arg11: memref<2x3x1xf32, #tpu.memory_space<vmem>>, %arg12: memref<8x1xf32, #tpu.memory_space<vmem>>, %arg13: memref<8x1xf32, #tpu.memory_space<vmem>>) attributes {dimension_semantics = [], scalar_prefetch = 0 : i64, scratch_operands = 0 : i64, tpu.core_type = #tpu.core_type<tc>} {
    %c0 = arith.constant 0 : index
    %c0_0 = arith.constant 0 : index
    %0 = vector.load %arg0[%c0, %c0_0] : memref<8x32xf32, #tpu.memory_space<vmem>>, vector<8x32xf32>
    %1 = arith.truncf %0 : vector<8x32xf32> to vector<8x32xbf16>
    %c0_1 = arith.constant 0 : index
    %c0_2 = arith.constant 0 : index
    %2 = vector.load %arg1[%c0_1, %c0_2] : memref<8x2xf32, #tpu.memory_space<vmem>>, vector<8x2xf32>
    %3 = arith.truncf %2 : vector<8x2xf32> to vector<8x2xbf16>
    %c0_3 = arith.constant 0 : index
    %c0_4 = arith.constant 0 : index
    %4 = vector.load %arg2[%c0_3, %c0_4] : memref<8x1xi32, #tpu.memory_space<vmem>>, vector<8x1xi32>
    %c0_5 = arith.constant 0 : index
    %c0_6 = arith.constant 0 : index
    %5 = vector.load %arg3[%c0_5, %c0_6] : memref<32x512xbf16, #tpu.memory_space<vmem>>, vector<32x512xbf16>
    %cst = arith.constant dense<0.000000e+00> : vector<8x512xf32>
    %6 = tpu.matmul %1, %5, %cst {dimension_numbers = #tpu.dot_dimension_numbers<[1], [0], [0], [1], [0, 0, 1, 1], [], []>} : vector<8x32xbf16>, vector<32x512xbf16>, vector<8x512xf32> -> vector<8x512xf32>
    %c0_7 = arith.constant 0 : index
    %c0_8 = arith.constant 0 : index
    %7 = vector.load %arg4[%c0_7, %c0_8] : memref<2x512xbf16, #tpu.memory_space<vmem>>, vector<2x512xbf16>
    %cst_9 = arith.constant dense<0.000000e+00> : vector<8x512xf32>
    %8 = tpu.matmul %3, %7, %cst_9 {dimension_numbers = #tpu.dot_dimension_numbers<[1], [0], [0], [1], [0, 0, 1, 1], [], []>} : vector<8x2xbf16>, vector<2x512xbf16>, vector<8x512xf32> -> vector<8x512xf32>
    %9 = arith.addf %6, %8 : vector<8x512xf32>
    %c0_10 = arith.constant 0 : index
    %c0_11 = arith.constant 0 : index
    %10 = vector.load %arg5[%c0_10, %c0_11] : memref<1x512xf32, #tpu.memory_space<vmem>>, vector<1x512xf32>
    %11 = vector.broadcast %10 : vector<1x512xf32> to vector<8x512xf32>
    %12 = arith.addf %9, %11 : vector<8x512xf32>
    %cst_12 = arith.constant 0.000000e+00 : f32
    %13 = vector.broadcast %cst_12 : f32 to vector<8x512xf32>
    %14 = arith.maximumf %12, %13 : vector<8x512xf32>
    %15 = vector.extract_strided_slice %14 {offsets = [0, 0], sizes = [8, 256], strides = [1, 1]} : vector<8x512xf32> to vector<8x256xf32>
    %16 = arith.truncf %15 : vector<8x256xf32> to vector<8x256xbf16>
    %c0_13 = arith.constant 0 : index
    %c0_14 = arith.constant 0 : index
    %c0_15 = arith.constant 0 : index
    %17 = vector.load %arg6[%c0_13, %c0_14, %c0_15] : memref<2x256x256xbf16, #tpu.memory_space<vmem>>, vector<1x256x256xbf16>
    %18 = vector.shape_cast %17 : vector<1x256x256xbf16> to vector<256x256xbf16>
    %cst_16 = arith.constant dense<0.000000e+00> : vector<8x256xf32>
    %19 = tpu.matmul %16, %18, %cst_16 {dimension_numbers = #tpu.dot_dimension_numbers<[1], [0], [0], [1], [0, 0, 1, 1], [], []>} : vector<8x256xbf16>, vector<256x256xbf16>, vector<8x256xf32> -> vector<8x256xf32>
    %c0_17 = arith.constant 0 : index
    %c0_18 = arith.constant 0 : index
    %c0_19 = arith.constant 0 : index
    %20 = vector.load %arg7[%c0_17, %c0_18, %c0_19] : memref<2x1x256xf32, #tpu.memory_space<vmem>>, vector<1x1x256xf32>
    %21 = vector.shape_cast %20 : vector<1x1x256xf32> to vector<1x256xf32>
    %22 = vector.broadcast %21 : vector<1x256xf32> to vector<8x256xf32>
    %23 = arith.addf %19, %22 : vector<8x256xf32>
    %cst_20 = arith.constant 0.000000e+00 : f32
    %24 = vector.broadcast %cst_20 : f32 to vector<8x256xf32>
    %25 = arith.maximumf %23, %24 : vector<8x256xf32>
    %26 = arith.truncf %25 : vector<8x256xf32> to vector<8x256xbf16>
    %c0_21 = arith.constant 0 : index
    %c0_22 = arith.constant 0 : index
    %c0_23 = arith.constant 0 : index
    %27 = vector.load %arg8[%c0_21, %c0_22, %c0_23] : memref<2x256x768xbf16, #tpu.memory_space<vmem>>, vector<1x256x768xbf16>
    %28 = vector.shape_cast %27 : vector<1x256x768xbf16> to vector<256x768xbf16>
    %cst_24 = arith.constant dense<0.000000e+00> : vector<8x768xf32>
    %29 = tpu.matmul %26, %28, %cst_24 {dimension_numbers = #tpu.dot_dimension_numbers<[1], [0], [0], [1], [0, 0, 1, 1], [], []>} : vector<8x256xbf16>, vector<256x768xbf16>, vector<8x768xf32> -> vector<8x768xf32>
    %c0_25 = arith.constant 0 : index
    %c0_26 = arith.constant 0 : index
    %c0_27 = arith.constant 0 : index
    %30 = vector.load %arg9[%c0_25, %c0_26, %c0_27] : memref<2x1x768xf32, #tpu.memory_space<vmem>>, vector<1x1x768xf32>
    %31 = vector.shape_cast %30 : vector<1x1x768xf32> to vector<1x768xf32>
    %32 = vector.broadcast %31 : vector<1x768xf32> to vector<8x768xf32>
    %33 = arith.addf %29, %32 : vector<8x768xf32>
    %cst_28 = arith.constant 0.000000e+00 : f32
    %34 = vector.broadcast %cst_28 : f32 to vector<8x768xf32>
    %35 = arith.maximumf %33, %34 : vector<8x768xf32>
    %c0_29 = arith.constant 0 : index
    %c0_30 = arith.constant 0 : index
    %c0_31 = arith.constant 0 : index
    %36 = vector.load %arg10[%c0_29, %c0_30, %c0_31] : memref<2x3x256xf32, #tpu.memory_space<vmem>>, vector<1x3x256xf32>
    %37 = vector.shape_cast %36 : vector<1x3x256xf32> to vector<3x256xf32>
    %c0_32 = arith.constant 0 : index
    %c0_33 = arith.constant 0 : index
    %c0_34 = arith.constant 0 : index
    %38 = vector.load %arg11[%c0_32, %c0_33, %c0_34] : memref<2x3x1xf32, #tpu.memory_space<vmem>>, vector<1x3x1xf32>
    %39 = vector.shape_cast %38 : vector<1x3x1xf32> to vector<3x1xf32>
    %cst_35 = arith.constant 0.000000e+00 : f32
    %40 = vector.broadcast %cst_35 : f32 to vector<8x1xf32>
    %41 = vector.extract_strided_slice %35 {offsets = [0, 0], sizes = [8, 256], strides = [1, 1]} : vector<8x768xf32> to vector<8x256xf32>
    %42 = vector.extract_strided_slice %37 {offsets = [0, 0], sizes = [1, 256], strides = [1, 1]} : vector<3x256xf32> to vector<1x256xf32>
    %43 = vector.broadcast %42 : vector<1x256xf32> to vector<8x256xf32>
    %44 = arith.mulf %41, %43 : vector<8x256xf32>
    %cst_36 = arith.constant dense<0.000000e+00> : vector<8xf32>
    %45 = vector.multi_reduction <add>, %44, %cst_36 [1] : vector<8x256xf32> to vector<8xf32>
    %46 = vector.shape_cast %45 : vector<8xf32> to vector<8x1xf32>
    %47 = vector.extract_strided_slice %39 {offsets = [0, 0], sizes = [1, 1], strides = [1, 1]} : vector<3x1xf32> to vector<1x1xf32>
    %48 = vector.broadcast %47 : vector<1x1xf32> to vector<8x1xf32>
    %49 = arith.addf %46, %48 : vector<8x1xf32>
    %c0_i32 = arith.constant 0 : i32
    %50 = vector.broadcast %c0_i32 : i32 to vector<8x1xi32>
    %51 = arith.cmpi eq, %4, %50 : vector<8x1xi32>
    %52 = arith.extui %51 : vector<8x1xi1> to vector<8x1xi32>
    %53 = arith.sitofp %52 : vector<8x1xi32> to vector<8x1xf32>
    %54 = arith.mulf %53, %49 : vector<8x1xf32>
    %55 = arith.addf %40, %54 : vector<8x1xf32>
    %56 = vector.extract_strided_slice %35 {offsets = [0, 256], sizes = [8, 256], strides = [1, 1]} : vector<8x768xf32> to vector<8x256xf32>
    %57 = vector.extract_strided_slice %37 {offsets = [1, 0], sizes = [1, 256], strides = [1, 1]} : vector<3x256xf32> to vector<1x256xf32>
    %58 = vector.broadcast %57 : vector<1x256xf32> to vector<8x256xf32>
    %59 = arith.mulf %56, %58 : vector<8x256xf32>
    %cst_37 = arith.constant dense<0.000000e+00> : vector<8xf32>
    %60 = vector.multi_reduction <add>, %59, %cst_37 [1] : vector<8x256xf32> to vector<8xf32>
    %61 = vector.shape_cast %60 : vector<8xf32> to vector<8x1xf32>
    %62 = vector.extract_strided_slice %39 {offsets = [1, 0], sizes = [1, 1], strides = [1, 1]} : vector<3x1xf32> to vector<1x1xf32>
    %63 = vector.broadcast %62 : vector<1x1xf32> to vector<8x1xf32>
    %64 = arith.addf %61, %63 : vector<8x1xf32>
    %c1_i32 = arith.constant 1 : i32
    %65 = vector.broadcast %c1_i32 : i32 to vector<8x1xi32>
    %66 = arith.cmpi eq, %4, %65 : vector<8x1xi32>
    %67 = arith.extui %66 : vector<8x1xi1> to vector<8x1xi32>
    %68 = arith.sitofp %67 : vector<8x1xi32> to vector<8x1xf32>
    %69 = arith.mulf %68, %64 : vector<8x1xf32>
    %70 = arith.addf %55, %69 : vector<8x1xf32>
    %71 = vector.extract_strided_slice %35 {offsets = [0, 512], sizes = [8, 256], strides = [1, 1]} : vector<8x768xf32> to vector<8x256xf32>
    %72 = vector.extract_strided_slice %37 {offsets = [2, 0], sizes = [1, 256], strides = [1, 1]} : vector<3x256xf32> to vector<1x256xf32>
    %73 = vector.broadcast %72 : vector<1x256xf32> to vector<8x256xf32>
    %74 = arith.mulf %71, %73 : vector<8x256xf32>
    %cst_38 = arith.constant dense<0.000000e+00> : vector<8xf32>
    %75 = vector.multi_reduction <add>, %74, %cst_38 [1] : vector<8x256xf32> to vector<8xf32>
    %76 = vector.shape_cast %75 : vector<8xf32> to vector<8x1xf32>
    %77 = vector.extract_strided_slice %39 {offsets = [2, 0], sizes = [1, 1], strides = [1, 1]} : vector<3x1xf32> to vector<1x1xf32>
    %78 = vector.broadcast %77 : vector<1x1xf32> to vector<8x1xf32>
    %79 = arith.addf %76, %78 : vector<8x1xf32>
    %c2_i32 = arith.constant 2 : i32
    %80 = vector.broadcast %c2_i32 : i32 to vector<8x1xi32>
    %81 = arith.cmpi eq, %4, %80 : vector<8x1xi32>
    %82 = arith.extui %81 : vector<8x1xi1> to vector<8x1xi32>
    %83 = arith.sitofp %82 : vector<8x1xi32> to vector<8x1xf32>
    %84 = arith.mulf %83, %79 : vector<8x1xf32>
    %85 = arith.addf %70, %84 : vector<8x1xf32>
    %c0_39 = arith.constant 0 : index
    %c0_40 = arith.constant 0 : index
    %86 = vector.load %arg12[%c0_39, %c0_40] : memref<8x1xf32, #tpu.memory_space<vmem>>, vector<8x1xf32>
    tpu.vector_store %arg12[%c0_39, %c0_40], %85 {strides = array<i32>} : memref<8x1xf32, #tpu.memory_space<vmem>>, vector<8x1xf32>,
    %87 = vector.extract_strided_slice %14 {offsets = [0, 256], sizes = [8, 256], strides = [1, 1]} : vector<8x512xf32> to vector<8x256xf32>
    %88 = arith.truncf %87 : vector<8x256xf32> to vector<8x256xbf16>
    %c1 = arith.constant 1 : index
    %c0_41 = arith.constant 0 : index
    %c0_42 = arith.constant 0 : index
    %89 = vector.load %arg6[%c1, %c0_41, %c0_42] : memref<2x256x256xbf16, #tpu.memory_space<vmem>>, vector<1x256x256xbf16>
    %90 = vector.shape_cast %89 : vector<1x256x256xbf16> to vector<256x256xbf16>
    %cst_43 = arith.constant dense<0.000000e+00> : vector<8x256xf32>
    %91 = tpu.matmul %88, %90, %cst_43 {dimension_numbers = #tpu.dot_dimension_numbers<[1], [0], [0], [1], [0, 0, 1, 1], [], []>} : vector<8x256xbf16>, vector<256x256xbf16>, vector<8x256xf32> -> vector<8x256xf32>
    %c1_44 = arith.constant 1 : index
    %c0_45 = arith.constant 0 : index
    %c0_46 = arith.constant 0 : index
    %92 = vector.load %arg7[%c1_44, %c0_45, %c0_46] : memref<2x1x256xf32, #tpu.memory_space<vmem>>, vector<1x1x256xf32>
    %93 = vector.shape_cast %92 : vector<1x1x256xf32> to vector<1x256xf32>
    %94 = vector.broadcast %93 : vector<1x256xf32> to vector<8x256xf32>
    %95 = arith.addf %91, %94 : vector<8x256xf32>
    %cst_47 = arith.constant 0.000000e+00 : f32
    %96 = vector.broadcast %cst_47 : f32 to vector<8x256xf32>
    %97 = arith.maximumf %95, %96 : vector<8x256xf32>
    %98 = arith.truncf %97 : vector<8x256xf32> to vector<8x256xbf16>
    %c1_48 = arith.constant 1 : index
    %c0_49 = arith.constant 0 : index
    %c0_50 = arith.constant 0 : index
    %99 = vector.load %arg8[%c1_48, %c0_49, %c0_50] : memref<2x256x768xbf16, #tpu.memory_space<vmem>>, vector<1x256x768xbf16>
    %100 = vector.shape_cast %99 : vector<1x256x768xbf16> to vector<256x768xbf16>
    %cst_51 = arith.constant dense<0.000000e+00> : vector<8x768xf32>
    %101 = tpu.matmul %98, %100, %cst_51 {dimension_numbers = #tpu.dot_dimension_numbers<[1], [0], [0], [1], [0, 0, 1, 1], [], []>} : vector<8x256xbf16>, vector<256x768xbf16>, vector<8x768xf32> -> vector<8x768xf32>
    %c1_52 = arith.constant 1 : index
    %c0_53 = arith.constant 0 : index
    %c0_54 = arith.constant 0 : index
    %102 = vector.load %arg9[%c1_52, %c0_53, %c0_54] : memref<2x1x768xf32, #tpu.memory_space<vmem>>, vector<1x1x768xf32>
    %103 = vector.shape_cast %102 : vector<1x1x768xf32> to vector<1x768xf32>
    %104 = vector.broadcast %103 : vector<1x768xf32> to vector<8x768xf32>
    %105 = arith.addf %101, %104 : vector<8x768xf32>
    %cst_55 = arith.constant 0.000000e+00 : f32
    %106 = vector.broadcast %cst_55 : f32 to vector<8x768xf32>
    %107 = arith.maximumf %105, %106 : vector<8x768xf32>
    %c1_56 = arith.constant 1 : index
    %c0_57 = arith.constant 0 : index
    %c0_58 = arith.constant 0 : index
    %108 = vector.load %arg10[%c1_56, %c0_57, %c0_58] : memref<2x3x256xf32, #tpu.memory_space<vmem>>, vector<1x3x256xf32>
    %109 = vector.shape_cast %108 : vector<1x3x256xf32> to vector<3x256xf32>
    %c1_59 = arith.constant 1 : index
    %c0_60 = arith.constant 0 : index
    %c0_61 = arith.constant 0 : index
    %110 = vector.load %arg11[%c1_59, %c0_60, %c0_61] : memref<2x3x1xf32, #tpu.memory_space<vmem>>, vector<1x3x1xf32>
    %111 = vector.shape_cast %110 : vector<1x3x1xf32> to vector<3x1xf32>
    %cst_62 = arith.constant 0.000000e+00 : f32
    %112 = vector.broadcast %cst_62 : f32 to vector<8x1xf32>
    %113 = vector.extract_strided_slice %107 {offsets = [0, 0], sizes = [8, 256], strides = [1, 1]} : vector<8x768xf32> to vector<8x256xf32>
    %114 = vector.extract_strided_slice %109 {offsets = [0, 0], sizes = [1, 256], strides = [1, 1]} : vector<3x256xf32> to vector<1x256xf32>
    %115 = vector.broadcast %114 : vector<1x256xf32> to vector<8x256xf32>
    %116 = arith.mulf %113, %115 : vector<8x256xf32>
    %cst_63 = arith.constant dense<0.000000e+00> : vector<8xf32>
    %117 = vector.multi_reduction <add>, %116, %cst_63 [1] : vector<8x256xf32> to vector<8xf32>
    %118 = vector.shape_cast %117 : vector<8xf32> to vector<8x1xf32>
    %119 = vector.extract_strided_slice %111 {offsets = [0, 0], sizes = [1, 1], strides = [1, 1]} : vector<3x1xf32> to vector<1x1xf32>
    %120 = vector.broadcast %119 : vector<1x1xf32> to vector<8x1xf32>
    %121 = arith.addf %118, %120 : vector<8x1xf32>
    %c0_i32_64 = arith.constant 0 : i32
    %122 = vector.broadcast %c0_i32_64 : i32 to vector<8x1xi32>
    %123 = arith.cmpi eq, %4, %122 : vector<8x1xi32>
    %124 = arith.extui %123 : vector<8x1xi1> to vector<8x1xi32>
    %125 = arith.sitofp %124 : vector<8x1xi32> to vector<8x1xf32>
    %126 = arith.mulf %125, %121 : vector<8x1xf32>
    %127 = arith.addf %112, %126 : vector<8x1xf32>
    %128 = vector.extract_strided_slice %107 {offsets = [0, 256], sizes = [8, 256], strides = [1, 1]} : vector<8x768xf32> to vector<8x256xf32>
    %129 = vector.extract_strided_slice %109 {offsets = [1, 0], sizes = [1, 256], strides = [1, 1]} : vector<3x256xf32> to vector<1x256xf32>
    %130 = vector.broadcast %129 : vector<1x256xf32> to vector<8x256xf32>
    %131 = arith.mulf %128, %130 : vector<8x256xf32>
    %cst_65 = arith.constant dense<0.000000e+00> : vector<8xf32>
    %132 = vector.multi_reduction <add>, %131, %cst_65 [1] : vector<8x256xf32> to vector<8xf32>
    %133 = vector.shape_cast %132 : vector<8xf32> to vector<8x1xf32>
    %134 = vector.extract_strided_slice %111 {offsets = [1, 0], sizes = [1, 1], strides = [1, 1]} : vector<3x1xf32> to vector<1x1xf32>
    %135 = vector.broadcast %134 : vector<1x1xf32> to vector<8x1xf32>
    %136 = arith.addf %133, %135 : vector<8x1xf32>
    %c1_i32_66 = arith.constant 1 : i32
    %137 = vector.broadcast %c1_i32_66 : i32 to vector<8x1xi32>
    %138 = arith.cmpi eq, %4, %137 : vector<8x1xi32>
    %139 = arith.extui %138 : vector<8x1xi1> to vector<8x1xi32>
    %140 = arith.sitofp %139 : vector<8x1xi32> to vector<8x1xf32>
    %141 = arith.mulf %140, %136 : vector<8x1xf32>
    %142 = arith.addf %127, %141 : vector<8x1xf32>
    %143 = vector.extract_strided_slice %107 {offsets = [0, 512], sizes = [8, 256], strides = [1, 1]} : vector<8x768xf32> to vector<8x256xf32>
    %144 = vector.extract_strided_slice %109 {offsets = [2, 0], sizes = [1, 256], strides = [1, 1]} : vector<3x256xf32> to vector<1x256xf32>
    %145 = vector.broadcast %144 : vector<1x256xf32> to vector<8x256xf32>
    %146 = arith.mulf %143, %145 : vector<8x256xf32>
    %cst_67 = arith.constant dense<0.000000e+00> : vector<8xf32>
    %147 = vector.multi_reduction <add>, %146, %cst_67 [1] : vector<8x256xf32> to vector<8xf32>
    %148 = vector.shape_cast %147 : vector<8xf32> to vector<8x1xf32>
    %149 = vector.extract_strided_slice %111 {offsets = [2, 0], sizes = [1, 1], strides = [1, 1]} : vector<3x1xf32> to vector<1x1xf32>
    %150 = vector.broadcast %149 : vector<1x1xf32> to vector<8x1xf32>
    %151 = arith.addf %148, %150 : vector<8x1xf32>
    %c2_i32_68 = arith.constant 2 : i32
    %152 = vector.broadcast %c2_i32_68 : i32 to vector<8x1xi32>
    %153 = arith.cmpi eq, %4, %152 : vector<8x1xi32>
    %154 = arith.extui %153 : vector<8x1xi1> to vector<8x1xi32>
    %155 = arith.sitofp %154 : vector<8x1xi32> to vector<8x1xf32>
    %156 = arith.mulf %155, %151 : vector<8x1xf32>
    %157 = arith.addf %142, %156 : vector<8x1xf32>
    %c0_69 = arith.constant 0 : index
    %c0_70 = arith.constant 0 : index
    %158 = vector.load %arg13[%c0_69, %c0_70] : memref<8x1xf32, #tpu.memory_space<vmem>>, vector<8x1xf32>
    tpu.vector_store %arg13[%c0_69, %c0_70], %157 {strides = array<i32>} : memref<8x1xf32, #tpu.memory_space<vmem>>, vector<8x1xf32>,
    return
  }
}

</mosaic_0001>

<bundles_post_ra>
// kernel: twin_critic_forward.1
= control target key start
LH: loop header
LB: loop body
LE: loop exit
PB: predicated region body
PF: predicated region fallthrough
CT: control target
= control target key end

     0   :  { %19 = vsyncpa [#allocation3], 0  ;;  %s4081_s0 = inlined_call_operand.vmem [shape: f32[8,32], index: 0, kind: input, shape index: {}]   ;;  %s4082_s1 = inlined_call_operand.vmem [shape: f32[8,2], index: 1, kind: input, shape index: {}]   ;;  %s4083_s2 = inlined_call_operand.vmem [shape: s32[8,1], index: 2, kind: input, shape index: {}]   ;;  %s4084_s3 = inlined_call_operand.hbm [shape: bf16[32,512], index: 3, kind: input, shape index: {}]   ;;  %s4085_s4 = inlined_call_operand.vmem [shape: bf16[2,512], index: 4, kind: input, shape index: {}]   ;;  %s4086_s5 = inlined_call_operand.vmem [shape: f32[1,512], index: 5, kind: input, shape index: {}]   ;;  %s4087_s6 = inlined_call_operand.hbm [shape: bf16[2,256,256], index: 6, kind: input, shape index: {}]   ;;  %s4088_s7 = inlined_call_operand.vmem [shape: f32[2,1,256], index: 7, kind: input, shape index: {}]   ;;  %s4089_s8 = inlined_call_operand.hbm [shape: bf16[2,256,768], index: 8, kind: input, shape index: {}]   ;;  %s4090_s9 = inlined_call_operand.vmem [shape: f32[2,1,768], index: 9, kind: input, shape index: {}]   ;;  %s4091_s10 = inlined_call_operand.vmem [shape: f32[2,3,256], index: 10, kind: input, shape index: {}]   ;;  %s4092_s11 = inlined_call_operand.vmem [shape: f32[2,3,1], index: 11, kind: input, shape index: {}]   ;;  %s4093_s12 = inlined_call_operand.vmem [shape: f32[8,1], index: 12, kind: output, shape index: {0}]   ;;  %s4094_s13 = inlined_call_operand.vmem [shape: f32[8,1], index: 13, kind: output, shape index: {1}]  }
   0x1   :  { %20 = vsyncpa [#allocation5], 0  ;;  %s48_s27 = sshll.u32 %s4087_s6, 4  ;;  %s3851_s28 = smov [#allocation4]   ;;  %s49_s27 = int_to_ptr.hbm [resolvable:$true] %s48_s27 }
   0x2   :  { %s50_s29 = sshll.u32 %s3851_s28, 4  ;;  %s31_s15 = sshll.u32 %s4084_s3, 4  ;;  %s51_s29 = int_to_ptr.vmem [resolvable:$true] %s50_s29  ;;  %s32_s15 = int_to_ptr.hbm [resolvable:$true] %s31_s15 }
   0x3   :  { %s3852_s16 = smov 128   ;;  %s3853_s17 = smov 8  }
   0x4   :  { %56 = dma.hbm_to_vmem [thread:$0]  %s49_s27, 8192, %s51_s29, [#allocation5], %s3852_s16, %s3852_s16, %s3853_s17  }
   0x5   :  { %s3854_s18 = smov [#allocation2]   ;;  %s3855_s20 = smov 256  }
   0x6   :  { %s33_s19 = sshll.u32 %s3854_s18, 4  ;;  %s3856_s21 = smov 16   ;;  %s34_s19 = int_to_ptr.vmem [resolvable:$true] %s33_s19 }
   0x7   :  { %39 = dma.hbm_to_vmem [thread:$0]  %s32_s15, 1024, %s34_s19, [#allocation3], %s3855_s20, %s3855_s20, %s3856_s21  }
   0x8   :  { %s63_s23 = sshll.u32 %s4089_s8, 4  ;;  %s3857_s24 = smov [#allocation6]   ;;  %s64_s23 = int_to_ptr.hbm [resolvable:$true] %s63_s23 }
   0x9   :  { %s65_s25 = sshll.u32 %s3857_s24, 4  ;;  %s3858_s26 = smov 384   ;;  %s66_s25 = int_to_ptr.vmem [resolvable:$true] %s65_s25 }
   0xa   :  { %s3859_s3 = smov 24  }
   0xb   :  { %71 = dma.hbm_to_vmem [thread:$0]  %s64_s23, 24576, %s66_s25, [#allocation5], %s3858_s26, %s3858_s26, %s3859_s3  }
   0xc   :  { %3847 = dma.done.wait [#allocation3], 1024  }
   0xd   :  { %3848 = vsyncadd [#allocation3], 4294966272 }
   0xe   :  { %3849 = dma.done.wait [#allocation5], 32768  }
   0xf   :  { %3850 = vsyncadd [#allocation5], 4294934528  ;;  %v104_v0 = vld [vmem:[%s4085_s4] sm:$0xf]  ;;  %v2452_v1 = vld [vmem:[#allocation2 + $0x20] sm:$0xf] }
  0x10   :  { %106 = vst [vmem:[#allocation1] ss:$9 sm:$0xff] %v104_v0  ;;  %v3507_v2 = vld [vmem:[#allocation2 + $0x2c] sm:$0xf0]  ;;  %v3505_v3 = vld [vmem:[#allocation2 + $0x24] sm:$0xf] }
  0x11   :  { %v2454_v4 = vld [vmem:[#allocation2 + $0x30] sm:$0xf0]  ;;  %vm115_vm0 = vcmask 1040384   ;;  %v93_v5 = vld [vmem:[%s4082_s1] sm:$0xff]  ;;  %v2436_v6 = vld [vmem:[#allocation2] sm:$0xf]  ;;  %v2453_v11 = vor.u32 %v3507_v2, %v2452_v1 }
  0x12   :  { %v3503_v7 = vld [vmem:[#allocation2 + $0xc] sm:$0xf0]  ;;  %v3501_v8 = vld [vmem:[#allocation2 + $0x4] sm:$0xf]  ;;  %v2438_v9 = vld [vmem:[#allocation2 + $0x10] sm:$0xf0]  ;;  %v2457_v12 = vor.u32 %v3505_v3, %v2454_v4  ;;  %v94_v22 = vpack.c.bf16 %v93_v5, %v93_v5 }
  0x13   :  { %v2460_v10 = vld [vmem:[#allocation2 + $0x28] sm:$0xf]  ;;  %v3508_v13 = vld [vmem:[#allocation2 + $0x34] sm:$0xf0]  ;;  %v3506_v14 = vld [vmem:[#allocation2 + $0x2c] sm:$0xf]  ;;  %v2437_v33 = vor.u32 %v3503_v7, %v2436_v6  ;;  %v2441_v34 = vor.u32 %v3501_v8, %v2438_v9 }
  0x14   :  { %v2462_v15 = vld [vmem:[#allocation2 + $0x38] sm:$0xf0]  ;;  %v2528_v19 = vld [vmem:[#allocation4 + $0x70] sm:$0xf]  ;;  %v2444_v25 = vld [vmem:[#allocation2 + $0x8] sm:$0xf]  ;;  %v2461_v29 = vor.u32 %v3508_v13, %v2460_v10 }
  0x15   :  { %v3504_v26 = vld [vmem:[#allocation2 + $0x14] sm:$0xf0]  ;;  %vm111_vm1 = vcmask 15360   ;;  %v2465_v30 = vor.u32 %v3506_v14, %v2462_v15  ;;  %v2592_v31 = vld [vmem:[#allocation4 + $0xf0] sm:$0xf]  ;;  %vm216_vm2 = vcmask 261120  }
  0x16   :  { %v3524_v27 = vld [vmem:[#allocation4 + $0x74] sm:$0xf0]  ;;  %v3502_v35 = vld [vmem:[#allocation2 + $0xc] sm:$0xf]  ;;  %v2446_v36 = vld [vmem:[#allocation2 + $0x18] sm:$0xf0]  ;;  %v2445_v44 = vor.u32 %v3504_v26, %v2444_v25 }
  0x17   :  { %v107_v16 = vld [vmem:[#allocation1] sm:$0xff]  ;;  %v108_v17 = vld [vmem:[#allocation1 + $0x9] sm:$0xff]  ;;  %v109_v18 = vld [vmem:[#allocation1 + $0x12] sm:$0xff]  ;;  %v2529_v41 = vor.u32 %v3524_v27, %v2528_v19  ;;  %v2449_v45 = vor.u32 %v3502_v35, %v2446_v36  ;;  %vm1355_vm6 = vcmask 7168  }
  0x18   :  { %v116_v20 = vsel %vm115_vm0, %v107_v16, 0  ;;  %v118_v21 = vsel %vm115_vm0, %v108_v17, 0  ;;  %v120_v23 = vsel %vm115_vm0, %v109_v18, 0  ;;  %v110_v24 = vld [vmem:[#allocation1 + $0x1b] sm:$0xff]  ;;  %v2530_v38 = vld [vmem:[#allocation4 + $0x78] sm:$0xf0] }
  0x19   :  { %131 = vmatpush.bf16.msra.mxu0 %v116_v20  ;;  %144 = vmatpush.bf16.msra.mxu1 %v118_v21  ;;  %v122_v28 = vsel %vm115_vm0, %v110_v24, 0  ;;  %v3540_v32 = vld [vmem:[#allocation4 + $0xf4] sm:$0xf0]  ;;  %v3523_v37 = vld [vmem:[#allocation4 + $0x74] sm:$0xf] }
  0x1a   :  { %157 = vmatpush.bf16.msra.mxu2 %v120_v23  ;;  %170 = vmatpush.bf16.msra.mxu3 %v122_v28  ;;  %v3539_v39 = vld [vmem:[#allocation4 + $0xf4] sm:$0xf]  ;;  %v2594_v40 = vld [vmem:[#allocation4 + $0xf8] sm:$0xf0]  ;;  %v2593_v42 = vor.u32 %v3540_v32, %v2592_v31  ;;  %v2520_v43 = vld [vmem:[#allocation4 + $0x60] sm:$0xf]  ;;  %v2533_v49 = vor.u32 %v3523_v37, %v2530_v38 }
  0x1b   :  { %v3522_v46 = vld [vmem:[#allocation4 + $0x64] sm:$0xf0]  ;;  %v2584_v47 = vld [vmem:[#allocation4 + $0xe0] sm:$0xf]  ;;  %v2597_v50 = vor.u32 %v3539_v39, %v2594_v40  ;;  %v3521_v51 = vld [vmem:[#allocation4 + $0x64] sm:$0xf] }
  0x1c   :  { %2430 = vmatmul.msk.bf16.vlgmr.msra.gmra.mxu0 %vm111_vm1, %v94_v22  ;;  %2431 = vmatmul.msk.bf16.vlgmr.msra.gmra.mxu1 %vm111_vm1, %v94_v22  ;;  %v3538_v48 = vld [vmem:[#allocation4 + $0xe4] sm:$0xf0]  ;;  %v2522_v52 = vld [vmem:[#allocation4 + $0x68] sm:$0xf0]  ;;  %v3537_v53 = vld [vmem:[#allocation4 + $0xe4] sm:$0xf]  ;;  %v2521_v55 = vor.u32 %v3522_v46, %v2520_v43 }
  0x1d   :  { %226 = vmatpush.bf16.msrb.mxu0 %v2453_v11  ;;  %239 = vmatpush.bf16.msrb.mxu1 %v2457_v12  ;;  %v2586_v54 = vld [vmem:[#allocation4 + $0xe8] sm:$0xf0]  ;;  %v2585_v56 = vor.u32 %v3538_v48, %v2584_v47  ;;  %v2525_v57 = vor.u32 %v3521_v51, %v2522_v52  ;;  %v91_v59 = vld [vmem:[%s4081_s0] sm:$0xff]  ;;  %v2512_v61 = vld [vmem:[#allocation4 + $0x50] sm:$0xf] }
  0x1e   :  { %252 = vmatpush.bf16.msrb.mxu2 %v2461_v29  ;;  %265 = vmatpush.bf16.msrb.mxu3 %v2465_v30  ;;  %v2589_v58 = vor.u32 %v3537_v53, %v2586_v54  ;;  %v92_v60 = vpack.c.bf16 %v91_v59, %v91_v59  ;;  %v3520_v62 = vld [vmem:[#allocation4 + $0x54] sm:$0xf0]  ;;  %v2576_v63 = vld [vmem:[#allocation4 + $0xd0] sm:$0xf]  ;;  %v3519_v2 = vld [vmem:[#allocation4 + $0x54] sm:$0xf] }
  0x1f   :  { %2432 = vmatmul.msk.bf16.vlgmr.msra.gmra.mxu2 %vm111_vm1, %v94_v22  ;;  %2433 = vmatmul.msk.bf16.vlgmr.msra.gmra.mxu3 %vm111_vm1, %v94_v22  ;;  %v2513_v0 = vor.u32 %v3520_v62, %v2512_v61  ;;  %v3536_v1 = vld [vmem:[#allocation4 + $0xd4] sm:$0xf0]  ;;  %v2514_v3 = vld [vmem:[#allocation4 + $0x58] sm:$0xf0]  ;;  %v3535_v6 = vld [vmem:[#allocation4 + $0xd4] sm:$0xf] }
  0x20   :  { %v2577_v4 = vor.u32 %v3536_v1, %v2576_v63  ;;  %v2517_v5 = vor.u32 %v3519_v2, %v2514_v3  ;;  %v2578_v7 = vld [vmem:[#allocation4 + $0xd8] sm:$0xf0]  ;;  %v2504_v8 = vld [vmem:[#allocation4 + $0x40] sm:$0xf]  ;;  %v3518_v10 = vld [vmem:[#allocation4 + $0x44] sm:$0xf0] }
  0x21   :  { %227 = vmatpush.bf16.msrb.mxu0 %v2437_v33  ;;  %240 = vmatpush.bf16.msrb.mxu1 %v2441_v34  ;;  %v2581_v9 = vor.u32 %v3535_v6, %v2578_v7  ;;  %v2568_v11 = vld [vmem:[#allocation4 + $0xc0] sm:$0xf]  ;;  %v3534_v12 = vld [vmem:[#allocation4 + $0xc4] sm:$0xf0]  ;;  %v2505_v13 = vor.u32 %v3518_v10, %v2504_v8  ;;  %v3517_v15 = vld [vmem:[#allocation4 + $0x44] sm:$0xf] }
  0x22   :  { %253 = vmatpush.bf16.msrb.mxu2 %v2445_v44  ;;  %266 = vmatpush.bf16.msrb.mxu3 %v2449_v45  ;;  %v2569_v14 = vor.u32 %v3534_v12, %v2568_v11  ;;  %v2506_v16 = vld [vmem:[#allocation4 + $0x48] sm:$0xf0]  ;;  %v3533_v17 = vld [vmem:[#allocation4 + $0xc4] sm:$0xf]  ;;  %v2496_v21 = vld [vmem:[#allocation4 + $0x30] sm:$0xf] }
  0x23   :  { %v2509_v18 = vor.u32 %v3517_v15, %v2506_v16  ;;  %v2570_v19 = vld [vmem:[#allocation4 + $0xc8] sm:$0xf0]  ;;  %v3516_v22 = vld [vmem:[#allocation4 + $0x34] sm:$0xf0]  ;;  %v2560_v23 = vld [vmem:[#allocation4 + $0xb0] sm:$0xf] }
  0x24   :  { %v2573_v20 = vor.u32 %v3533_v17, %v2570_v19  ;;  %v2497_v24 = vor.u32 %v3516_v22, %v2496_v21  ;;  %v3532_v25 = vld [vmem:[#allocation4 + $0xb4] sm:$0xf0]  ;;  %v3515_v26 = vld [vmem:[#allocation4 + $0x34] sm:$0xf]  ;;  %v2498_v27 = vld [vmem:[#allocation4 + $0x38] sm:$0xf0] }
  0x25   :  { %490 = vmatpush.bf16.msra.mxu0 %v2529_v41  ;;  %503 = vmatpush.bf16.msra.mxu1 %v2593_v42  ;;  %v2561_v28 = vor.u32 %v3532_v25, %v2560_v23  ;;  %v2501_v29 = vor.u32 %v3515_v26, %v2498_v27  ;;  %v3531_v30 = vld [vmem:[#allocation4 + $0xb4] sm:$0xf]  ;;  %v2562_v31 = vld [vmem:[#allocation4 + $0xb8] sm:$0xf0]  ;;  %v2488_v32 = vld [vmem:[#allocation4 + $0x20] sm:$0xf] }
  0x26   :  { %516 = vmatpush.bf16.msra.mxu2 %v2533_v49  ;;  %529 = vmatpush.bf16.msra.mxu3 %v2597_v50  ;;  %v2565_v33 = vor.u32 %v3531_v30, %v2562_v31  ;;  %v3514_v34 = vld [vmem:[#allocation4 + $0x24] sm:$0xf0]  ;;  %v2552_v35 = vld [vmem:[#allocation4 + $0xa0] sm:$0xf]  ;;  %v3513_v39 = vld [vmem:[#allocation4 + $0x24] sm:$0xf] }
  0x27   :  { %v3530_v36 = vld [vmem:[#allocation4 + $0xa4] sm:$0xf0]  ;;  %v2489_v37 = vor.u32 %v3514_v34, %v2488_v32  ;;  %v2490_v40 = vld [vmem:[#allocation4 + $0x28] sm:$0xf0]  ;;  %v3529_v41 = vld [vmem:[#allocation4 + $0xa4] sm:$0xf] }
  0x28   :  { %v2553_v38 = vor.u32 %v3530_v36, %v2552_v35  ;;  %v2493_v42 = vor.u32 %v3513_v39, %v2490_v40  ;;  %v2554_v43 = vld [vmem:[#allocation4 + $0xa8] sm:$0xf0]  ;;  %v2480_v45 = vld [vmem:[#allocation4 + $0x10] sm:$0xf]  ;;  %v3512_v46 = vld [vmem:[#allocation4 + $0x14] sm:$0xf0] }
  0x29   :  { %491 = vmatpush.bf16.msra.mxu0 %v2521_v55  ;;  %504 = vmatpush.bf16.msra.mxu1 %v2585_v56  ;;  %v2557_v44 = vor.u32 %v3529_v41, %v2554_v43  ;;  %v2544_v47 = vld [vmem:[#allocation4 + $0x90] sm:$0xf]  ;;  %v2481_v48 = vor.u32 %v3512_v46, %v2480_v45  ;;  %v3528_v49 = vld [vmem:[#allocation4 + $0x94] sm:$0xf0]  ;;  %v3511_v50 = vld [vmem:[#allocation4 + $0x14] sm:$0xf] }
  0x2a   :  { %517 = vmatpush.bf16.msra.mxu2 %v2525_v57  ;;  %530 = vmatpush.bf16.msra.mxu3 %v2589_v58  ;;  %v2545_v51 = vor.u32 %v3528_v49, %v2544_v47  ;;  %v2482_v52 = vld [vmem:[#allocation4 + $0x18] sm:$0xf0]  ;;  %v3527_v53 = vld [vmem:[#allocation4 + $0x94] sm:$0xf]  ;;  %v2472_v57 = vld [vmem:[#allocation4] sm:$0xf] }
  0x2b   :  { %v2485_v54 = vor.u32 %v3511_v50, %v2482_v52  ;;  %v2546_v55 = vld [vmem:[#allocation4 + $0x98] sm:$0xf0]  ;;  %v3510_v58 = vld [vmem:[#allocation4 + $0x4] sm:$0xf0]  ;;  %v2536_v59 = vld [vmem:[#allocation4 + $0x80] sm:$0xf] }
  0x2c   :  { %2466 = vmatmul.msk.bf16.vlgmr.msrb.gmra.mxu0 %vm216_vm2, %v92_v60  ;;  %2467 = vmatmul.msk.bf16.vlgmr.msrb.gmra.mxu1 %vm216_vm2, %v92_v60  ;;  %v2549_v56 = vor.u32 %v3527_v53, %v2546_v55  ;;  %v3526_v61 = vld [vmem:[#allocation4 + $0x84] sm:$0xf0]  ;;  %v3509_v62 = vld [vmem:[#allocation4 + $0x4] sm:$0xf]  ;;  %v2474_v63 = vld [vmem:[#allocation4 + $0x8] sm:$0xf0] }
  0x2d   :  { %492 = vmatpush.bf16.msra.mxu0 %v2513_v0  ;;  %505 = vmatpush.bf16.msra.mxu1 %v2577_v4  ;;  %v2537_v0 = vor.u32 %v3526_v61, %v2536_v59  ;;  %v2477_v1 = vor.u32 %v3509_v62, %v2474_v63  ;;  %v3525_v2 = vld [vmem:[#allocation4 + $0x84] sm:$0xf]  ;;  %v2538_v3 = vld [vmem:[#allocation4 + $0x88] sm:$0xf0]  ;;  %v3586_v6 = vld [vmem:[#allocation6 + $0x164] sm:$0xf0] }
  0x2e   :  { %518 = vmatpush.bf16.msra.mxu2 %v2517_v5  ;;  %531 = vmatpush.bf16.msra.mxu3 %v2581_v9  ;;  %v2541_v4 = vor.u32 %v3525_v2, %v2538_v3  ;;  %v2768_v5 = vld [vmem:[#allocation6 + $0x150] sm:$0xf]  ;;  %v3583_v7 = vld [vmem:[#allocation6 + $0x154] sm:$0xf]  ;;  %v2770_v9 = vld [vmem:[#allocation6 + $0x168] sm:$0xf0] }
  0x2f   :  { %2468 = vmatmul.msk.bf16.vlgmr.msrb.gmra.mxu2 %vm216_vm2, %v92_v60  ;;  %2469 = vmatmul.msk.bf16.vlgmr.msrb.gmra.mxu3 %vm216_vm2, %v92_v60  ;;  %v2473_v60 = vor.u32 %v3510_v58, %v2472_v57  ;;  %v2769_v8 = vor.u32 %v3586_v6, %v2768_v5  ;;  %v2744_v10 = vld [vmem:[#allocation6 + $0x120] sm:$0xf]  ;;  %v3580_v11 = vld [vmem:[#allocation6 + $0x134] sm:$0xf0]  ;;  %v2773_v12 = vor.u32 %v3583_v7, %v2770_v9  ;;  %v2960_v15 = vld [vmem:[#allocation6 + $0x2d0] sm:$0xf] }
  0x30   :  { %v2745_v16 = vor.u32 %v3580_v11, %v2744_v10  ;;  %v3634_v17 = vld [vmem:[#allocation6 + $0x2e4] sm:$0xf0]  ;;  %v2962_v19 = vld [vmem:[#allocation6 + $0x2e8] sm:$0xf0]  ;;  %v2720_v23 = vld [vmem:[#allocation6 + $0xf0] sm:$0xf] }
  0x31   :  { %493 = vmatpush.bf16.msra.mxu0 %v2505_v13  ;;  %506 = vmatpush.bf16.msra.mxu1 %v2569_v14  ;;  %v3577_v13 = vld [vmem:[#allocation6 + $0x124] sm:$0xf]  ;;  %v2746_v14 = vld [vmem:[#allocation6 + $0x138] sm:$0xf0]  ;;  %v2961_v21 = vor.u32 %v3634_v17, %v2960_v15  ;;  %v3571_v25 = vld [vmem:[#allocation6 + $0xf4] sm:$0xf] }
  0x32   :  { %519 = vmatpush.bf16.msra.mxu2 %v2509_v18  ;;  %532 = vmatpush.bf16.msra.mxu3 %v2573_v20  ;;  %v3631_v18 = vld [vmem:[#allocation6 + $0x2d4] sm:$0xf]  ;;  %v2749_v20 = vor.u32 %v3577_v13, %v2746_v14  ;;  %v2722_v26 = vld [vmem:[#allocation6 + $0x108] sm:$0xf0]  ;;  %v2936_v27 = vld [vmem:[#allocation6 + $0x2a0] sm:$0xf] }
  0x33   :  { %v2965_v22 = vor.u32 %v3631_v18, %v2962_v19  ;;  %v3625_v32 = vld [vmem:[#allocation6 + $0x2a4] sm:$0xf]  ;;  %v2696_v36 = vld [vmem:[#allocation6 + $0xc0] sm:$0xf]  ;;  %v2912_v39 = vld [vmem:[#allocation6 + $0x270] sm:$0xf] }
  0x34   :  { %v3622_v40 = vld [vmem:[#allocation6 + $0x284] sm:$0xf0]  ;;  %v3619_v41 = vld [vmem:[#allocation6 + $0x274] sm:$0xf]  ;;  %v2698_v43 = vld [vmem:[#allocation6 + $0xd8] sm:$0xf0] }
  0x35   :  { %494 = vmatpush.bf16.msra.mxu0 %v2497_v24  ;;  %507 = vmatpush.bf16.msra.mxu1 %v2561_v28  ;;  %v3574_v24 = vld [vmem:[#allocation6 + $0x104] sm:$0xf0]  ;;  %v3628_v28 = vld [vmem:[#allocation6 + $0x2b4] sm:$0xf0]  ;;  %v2913_v45 = vor.u32 %v3622_v40, %v2912_v39  ;;  %v2888_v47 = vld [vmem:[#allocation6 + $0x240] sm:$0xf] }
  0x36   :  { %520 = vmatpush.bf16.msra.mxu2 %v2501_v29  ;;  %533 = vmatpush.bf16.msra.mxu3 %v2565_v33  ;;  %v2937_v31 = vor.u32 %v3628_v28, %v2936_v27  ;;  %v2938_v33 = vld [vmem:[#allocation6 + $0x2b8] sm:$0xf0]  ;;  %v2721_v34 = vor.u32 %v3574_v24, %v2720_v23  ;;  %v3616_v49 = vld [vmem:[#allocation6 + $0x254] sm:$0xf0]  ;;  %v3613_v50 = vld [vmem:[#allocation6 + $0x244] sm:$0xf] }
  0x37   :  { %v2941_v35 = vor.u32 %v3625_v32, %v2938_v33  ;;  %v2672_v53 = vld [vmem:[#allocation6 + $0x90] sm:$0xf]  ;;  %v3559_v55 = vld [vmem:[#allocation6 + $0x94] sm:$0xf]  ;;  %v2889_v59 = vor.u32 %v3616_v49, %v2888_v47  ;;  %v2866_v3 = vld [vmem:[#allocation6 + $0x228] sm:$0xf0] }
  0x38   :  { %v2864_v61 = vld [vmem:[#allocation6 + $0x210] sm:$0xf]  ;;  %v3607_v2 = vld [vmem:[#allocation6 + $0x214] sm:$0xf]  ;;  %v2648_v5 = vld [vmem:[#allocation6 + $0x60] sm:$0xf] }
  0x39   :  { %495 = vmatpush.bf16.msra.mxu0 %v2489_v37  ;;  %508 = vmatpush.bf16.msra.mxu1 %v2553_v38  ;;  %v3568_v37 = vld [vmem:[#allocation6 + $0xd4] sm:$0xf0]  ;;  %v2725_v38 = vor.u32 %v3571_v25, %v2722_v26  ;;  %v3553_v7 = vld [vmem:[#allocation6 + $0x64] sm:$0xf]  ;;  %v2869_v11 = vor.u32 %v3607_v2, %v2866_v3  ;;  %v2624_v18 = vld [vmem:[#allocation6 + $0x30] sm:$0xf] }
  0x3a   :  { %521 = vmatpush.bf16.msra.mxu2 %v2493_v42  ;;  %534 = vmatpush.bf16.msra.mxu3 %v2557_v44  ;;  %v3565_v42 = vld [vmem:[#allocation6 + $0xc4] sm:$0xf]  ;;  %v2914_v44 = vld [vmem:[#allocation6 + $0x288] sm:$0xf0]  ;;  %v3556_v6 = vld [vmem:[#allocation6 + $0x74] sm:$0xf0] }
  0x3b   :  { %v2917_v46 = vor.u32 %v3619_v41, %v2914_v44  ;;  %v2701_v52 = vor.u32 %v3565_v42, %v2698_v43  ;;  %v3968_v9 = vld [vmem:[%s4086_s5] sm:$0xf]  ;;  %v2649_v13 = vor.u32 %v3556_v6, %v2648_v5  ;;  %v3601_v15 = vld [vmem:[#allocation6 + $0x1e4] sm:$0xf]  ;;  %v3550_v19 = vld [vmem:[#allocation6 + $0x44] sm:$0xf0] }
  0x3c   :  { %v3604_v14 = vld [vmem:[#allocation6 + $0x1f4] sm:$0xf0]  ;;  %v2626_v23 = vld [vmem:[#allocation6 + $0x48] sm:$0xf0]  ;;  %v2816_v28 = vld [vmem:[#allocation6 + $0x1b0] sm:$0xf] }
  0x3d   :  { %496 = vmatpush.bf16.msra.mxu0 %v2481_v48  ;;  %509 = vmatpush.bf16.msra.mxu1 %v2545_v51  ;;  %v2697_v48 = vor.u32 %v3568_v37, %v2696_v36  ;;  %v2890_v51 = vld [vmem:[#allocation6 + $0x258] sm:$0xf0]  ;;  %v3598_v36 = vld [vmem:[#allocation6 + $0x1c4] sm:$0xf0]  ;;  %v3595_v37 = vld [vmem:[#allocation6 + $0x1b4] sm:$0xf] }
  0x3e   :  { %522 = vmatpush.bf16.msra.mxu2 %v2485_v54  ;;  %535 = vmatpush.bf16.msra.mxu3 %v2549_v56  ;;  %v3562_v54 = vld [vmem:[#allocation6 + $0xa4] sm:$0xf0]  ;;  %v2674_v56 = vld [vmem:[#allocation6 + $0xa8] sm:$0xf0]  ;;  %v2600_v40 = vld [vmem:[#allocation6] sm:$0xf] }
  0x3f   :  { %v3544_v41 = vld [vmem:[#allocation6 + $0x14] sm:$0xf0]  ;;  %v3541_v42 = vld [vmem:[#allocation6 + $0x4] sm:$0xf]  ;;  %v3587_v47 = vld [vmem:[#allocation6 + $0x16c] sm:$0xf0] }
  0x40   :  { %v277_v5 = vperm.slane %v3968_v9, 3 }
  0x41   :  { %497 = vmatpush.bf16.msra.mxu0 %v2473_v60  ;;  %510 = vmatpush.bf16.msra.mxu1 %v2537_v0  ;;  %v2893_v60 = vor.u32 %v3613_v50, %v2890_v51  ;;  %v2673_v0 = vor.u32 %v3562_v54, %v2672_v53  ;;  %v2792_v50 = vld [vmem:[#allocation6 + $0x180] sm:$0xf]  ;;  %v3592_v53 = vld [vmem:[#allocation6 + $0x194] sm:$0xf0]  ;;  %v3589_v54 = vld [vmem:[#allocation6 + $0x184] sm:$0xf] }
  0x42   :  { %523 = vmatpush.bf16.msra.mxu2 %v2477_v1  ;;  %536 = vmatpush.bf16.msra.mxu3 %v2541_v4  ;;  %v3610_v1 = vld [vmem:[#allocation6 + $0x224] sm:$0xf0]  ;;  %v2677_v4 = vor.u32 %v3559_v55, %v2674_v56  ;;  %v2794_v55 = vld [vmem:[#allocation6 + $0x198] sm:$0xf0]  ;;  %v2968_v56 = vld [vmem:[#allocation6 + $0x2d8] sm:$0xf] }
  0x43   :  { %v2865_v10 = vor.u32 %v3610_v1, %v2864_v61  ;;  %v2970_v1 = vld [vmem:[#allocation6 + $0x2f0] sm:$0xf0] }
  0x45   :  { %1136 = vmatpush.bf16.msrb.mxu0 %v2769_v8  ;;  %1149 = vmatpush.bf16.msrb.mxu1 %v2961_v21  ;;  %v2650_v8 = vld [vmem:[#allocation6 + $0x78] sm:$0xf0]  ;;  %v275_v21 = vperm.slane %v3968_v9, 1 }
  0x46   :  { %1162 = vmatpush.bf16.msrb.mxu2 %v2773_v12  ;;  %1175 = vmatpush.bf16.msrb.mxu3 %v2965_v22  ;;  %v2840_v12 = vld [vmem:[#allocation6 + $0x1e0] sm:$0xf]  ;;  %v2653_v17 = vor.u32 %v3553_v7, %v2650_v8  ;;  %v3547_v22 = vld [vmem:[#allocation6 + $0x34] sm:$0xf]  ;;  %v2752_v8 = vld [vmem:[#allocation6 + $0x128] sm:$0xf] }
  0x47   :  { %v2841_v26 = vor.u32 %v3604_v14, %v2840_v12  ;;  %v2629_v39 = vor.u32 %v3547_v22, %v2626_v23  ;;  %v2754_v14 = vld [vmem:[#allocation6 + $0x140] sm:$0xf0]  ;;  %v3629_v22 = vld [vmem:[#allocation6 + $0x2bc] sm:$0xf0]  ;;  %v3626_v23 = vld [vmem:[#allocation6 + $0x2ac] sm:$0xf] }
  0x49   :  { %1137 = vmatpush.bf16.msrb.mxu0 %v2745_v16  ;;  %1150 = vmatpush.bf16.msrb.mxu1 %v2937_v31  ;;  %v2842_v16 = vld [vmem:[#allocation6 + $0x1f8] sm:$0xf0] }
  0x4a   :  { %1163 = vmatpush.bf16.msrb.mxu2 %v2749_v20  ;;  %1176 = vmatpush.bf16.msrb.mxu3 %v2941_v35  ;;  %v274_v20 = vperm.slane %v3968_v9, 0  ;;  %v2845_v27 = vor.u32 %v3601_v15, %v2842_v16  ;;  %v2625_v35 = vor.u32 %v3550_v19, %v2624_v18  ;;  %v2793_v15 = vor.u32 %v3592_v53, %v2792_v50  ;;  %v3563_v53 = vld [vmem:[#allocation6 + $0xac] sm:$0xf0] }
  0x4b   :  { %v2797_v16 = vor.u32 %v3589_v54, %v2794_v55  ;;  %v3560_v54 = vld [vmem:[#allocation6 + $0x9c] sm:$0xf]  ;;  %v2682_v55 = vld [vmem:[#allocation6 + $0xb0] sm:$0xf0] }
  0x4d   :  { %1138 = vmatpush.bf16.msrb.mxu0 %v2721_v34  ;;  %1151 = vmatpush.bf16.msrb.mxu1 %v2913_v45  ;;  %v2602_v45 = vld [vmem:[#allocation6 + $0x18] sm:$0xf0] }
  0x4e   :  { %1164 = vmatpush.bf16.msrb.mxu2 %v2725_v38  ;;  %1177 = vmatpush.bf16.msrb.mxu3 %v2917_v46  ;;  %v2818_v38 = vld [vmem:[#allocation6 + $0x1c8] sm:$0xf0]  ;;  %v2776_v46 = vld [vmem:[#allocation6 + $0x158] sm:$0xf]  ;;  %v2605_v61 = vor.u32 %v3541_v42, %v2602_v45  ;;  %v2706_v45 = vld [vmem:[#allocation6 + $0xe0] sm:$0xf0] }
  0x4f   :  { %v2821_v49 = vor.u32 %v3595_v37, %v2818_v38  ;;  %v2777_v6 = vor.u32 %v3587_v47, %v2776_v46  ;;  %v2922_v37 = vld [vmem:[#allocation6 + $0x290] sm:$0xf0] }
  0x51   :  { %1139 = vmatpush.bf16.msrb.mxu0 %v2697_v48  ;;  %1152 = vmatpush.bf16.msrb.mxu1 %v2889_v59  ;;  %v2817_v48 = vor.u32 %v3598_v36, %v2816_v28  ;;  %v2728_v28 = vld [vmem:[#allocation6 + $0xf8] sm:$0xf]  ;;  %v3620_v36 = vld [vmem:[#allocation6 + $0x27c] sm:$0xf] }
  0x52   :  { %1165 = vmatpush.bf16.msrb.mxu2 %v2701_v52  ;;  %1178 = vmatpush.bf16.msrb.mxu3 %v2893_v60  ;;  %v2601_v60 = vor.u32 %v3544_v41, %v2600_v40  ;;  %v2704_v40 = vld [vmem:[#allocation6 + $0xc8] sm:$0xf]  ;;  %v2925_v47 = vor.u32 %v3620_v36, %v2922_v37  ;;  %v3593_v37 = vld [vmem:[#allocation6 + $0x19c] sm:$0xf0] }
  0x53   :  { %v2800_v36 = vld [vmem:[#allocation6 + $0x188] sm:$0xf] }
  0x55   :  { %1140 = vmatpush.bf16.msrb.mxu0 %v2673_v0  ;;  %1153 = vmatpush.bf16.msrb.mxu1 %v2865_v10  ;;  %v3632_v0 = vld [vmem:[#allocation6 + $0x2dc] sm:$0xf]  ;;  %v3581_v10 = vld [vmem:[#allocation6 + $0x13c] sm:$0xf0] }
  0x56   :  { %1166 = vmatpush.bf16.msrb.mxu2 %v2677_v4  ;;  %1179 = vmatpush.bf16.msrb.mxu3 %v2869_v11  ;;  %v276_v4 = vperm.slane %v3968_v9, 2  ;;  %v2973_v19 = vor.u32 %v3632_v0, %v2970_v1  ;;  %v3554_v0 = vld [vmem:[#allocation6 + $0x6c] sm:$0xf] }
  0x59   :  { %1141 = vmatpush.bf16.msrb.mxu0 %v2649_v13  ;;  %1154 = vmatpush.bf16.msrb.mxu1 %v2841_v26  ;;  %v3578_v13 = vld [vmem:[#allocation6 + $0x12c] sm:$0xf] }
  0x5a   :  { %1167 = vmatpush.bf16.msrb.mxu2 %v2653_v17  ;;  %1180 = vmatpush.bf16.msrb.mxu3 %v2845_v27  ;;  %v2757_v27 = vor.u32 %v3578_v13, %v2754_v14  ;;  %v3548_v13 = vld [vmem:[#allocation6 + $0x3c] sm:$0xf] }
  0x5d   :  { %1142 = vmatpush.bf16.msrb.mxu0 %v2625_v35  ;;  %1155 = vmatpush.bf16.msrb.mxu1 %v2817_v48  ;;  %v3623_v35 = vld [vmem:[#allocation6 + $0x28c] sm:$0xf0]  ;;  %v3614_v48 = vld [vmem:[#allocation6 + $0x24c] sm:$0xf] }
  0x5e   :  { %1168 = vmatpush.bf16.msrb.mxu2 %v2629_v39  ;;  %1181 = vmatpush.bf16.msrb.mxu3 %v2821_v49  ;;  %v2898_v49 = vld [vmem:[#allocation6 + $0x260] sm:$0xf0] }
  0x61   :  { %1143 = vmatpush.bf16.msrb.mxu0 %v2601_v60  ;;  %1156 = vmatpush.bf16.msrb.mxu1 %v2793_v15  ;;  %v2656_v60 = vld [vmem:[#allocation6 + $0x68] sm:$0xf]  ;;  %v2634_v15 = vld [vmem:[#allocation6 + $0x50] sm:$0xf0] }
  0x62   :  { %1169 = vmatpush.bf16.msrb.mxu2 %v2605_v61  ;;  %1182 = vmatpush.bf16.msrb.mxu3 %v2797_v16  ;;  %v3557_v61 = vld [vmem:[#allocation6 + $0x7c] sm:$0xf0]  ;;  %v2637_v16 = vor.u32 %v3548_v13, %v2634_v15  ;;  %v2738_v13 = vld [vmem:[#allocation6 + $0x118] sm:$0xf0] }
  0x63   :  { %v2657_v1 = vor.u32 %v3557_v61, %v2656_v60  ;;  %v2762_v60 = vld [vmem:[#allocation6 + $0x148] sm:$0xf0] }
  0x99   :  { %v3957_v29 = vpop.f32.mrf.mxu0  ;;  %v3959_v30 = vpop.f32.mrf.mxu1 }
  0xa1   :  { %v135_v57 = vpop.f32.mrf.mxu0  ;;  %v148_v58 = vpop.f32.mrf.mxu1 }
  0xa2   :  { %v3961_v62 = vpop.f32.mrf.mxu2  ;;  %v3963_v63 = vpop.f32.mrf.mxu3  ;;  %v3635_v57 = vld [vmem:[#allocation6 + $0x2ec] sm:$0xf0] }
  0xa3   :  { %v2969_v17 = vor.u32 %v3635_v57, %v2968_v56  ;;  %v2901_v57 = vor.u32 %v3614_v48, %v2898_v49  ;;  %v3585_v48 = vld [vmem:[#allocation6 + $0x164] sm:$0xf]  ;;  %v2786_v49 = vld [vmem:[#allocation6 + $0x178] sm:$0xf0] }
  0xa9   :  { %v229_v24 = vpop.f32.mrf.mxu0  ;;  %v242_v25 = vpop.f32.mrf.mxu1 }
  0xaa   :  { %v230_v31 = vadd.f32 %v229_v24, %v3957_v29  ;;  %v243_v32 = vadd.f32 %v242_v25, %v3959_v30  ;;  %v161_v33 = vpop.f32.mrf.mxu2  ;;  %v174_v34 = vpop.f32.mrf.mxu3  ;;  %v3584_v29 = vld [vmem:[#allocation6 + $0x15c] sm:$0xf]  ;;  %v2778_v30 = vld [vmem:[#allocation6 + $0x170] sm:$0xf0]  ;;  %v2946_v24 = vld [vmem:[#allocation6 + $0x2c0] sm:$0xf0] }
  0xab   :  { %v2781_v7 = vor.u32 %v3584_v29, %v2778_v30  ;;  %v2949_v33 = vor.u32 %v3626_v23, %v2946_v24  ;;  %v2920_v34 = vld [vmem:[#allocation6 + $0x278] sm:$0xf]  ;;  %v2896_v29 = vld [vmem:[#allocation6 + $0x248] sm:$0xf]  ;;  %v3617_v30 = vld [vmem:[#allocation6 + $0x25c] sm:$0xf0] }
  0xac   :  { %v282_v43 = vadd.f32 %v274_v20, %v230_v31  ;;  %v283_v44 = vadd.f32 %v275_v21, %v243_v32  ;;  %v2944_v20 = vld [vmem:[#allocation6 + $0x2a8] sm:$0xf]  ;;  %v2753_v21 = vor.u32 %v3581_v10, %v2752_v8  ;;  %v2730_v31 = vld [vmem:[#allocation6 + $0x110] sm:$0xf0]  ;;  %v2921_v46 = vor.u32 %v3623_v35, %v2920_v34  ;;  %v3545_v23 = vld [vmem:[#allocation6 + $0x1c] sm:$0xf0] }
  0xad   :  { %v2945_v32 = vor.u32 %v3629_v22, %v2944_v20  ;;  %v2897_v56 = vor.u32 %v3617_v30, %v2896_v29  ;;  %v2874_v8 = vld [vmem:[#allocation6 + $0x230] sm:$0xf0]  ;;  %v2850_v20 = vld [vmem:[#allocation6 + $0x200] sm:$0xf0]  ;;  %v2608_v22 = vld [vmem:[#allocation6 + $0x8] sm:$0xf] }
  0xae   :  { %v286_v51 = vmax.f32 %v282_v43, 0.0  ;;  %v287_v52 = vmax.f32 %v283_v44, 0.0  ;;  %v3569_v43 = vld [vmem:[#allocation6 + $0xdc] sm:$0xf0]  ;;  %v3566_v44 = vld [vmem:[#allocation6 + $0xcc] sm:$0xf]  ;;  %v2609_v24 = vor.u32 %v3545_v23, %v2608_v22 }
  0xaf   :  { %v2705_v50 = vor.u32 %v3569_v43, %v2704_v40  ;;  %v2826_v34 = vld [vmem:[#allocation6 + $0x1d0] sm:$0xf0]  ;;  %v2802_v40 = vld [vmem:[#allocation6 + $0x1a0] sm:$0xf0]  ;;  %v3588_v30 = vld [vmem:[#allocation6 + $0x174] sm:$0xf0] }
  0xb0   :  { %v290_v58 = vpack.c.bf16 %v286_v51, %v286_v51  ;;  %v291_v59 = vpack.c.bf16 %v287_v52, %v287_v52  ;;  %v2709_v51 = vor.u32 %v3566_v44, %v2706_v45  ;;  %v2680_v52 = vld [vmem:[#allocation6 + $0x98] sm:$0xf]  ;;  %v2954_v22 = vld [vmem:[#allocation6 + $0x2c8] sm:$0xf0]  ;;  %v2712_v23 = vld [vmem:[#allocation6 + $0xd0] sm:$0xf] }
  0xb1   :  { %v231_v2 = vpop.f32.mrf.mxu0  ;;  %v244_v3 = vpop.f32.mrf.mxu1 }
  0xb2   :  { %498 = vmatmul.bf16.vlgmr.msra.gmra.mxu0 %v290_v58  ;;  %511 = vmatmul.bf16.vlgmr.msra.gmra.mxu1 %v291_v59  ;;  %v255_v11 = vpop.f32.mrf.mxu2  ;;  %v268_v12 = vpop.f32.mrf.mxu3  ;;  %v2658_v2 = vld [vmem:[#allocation6 + $0x80] sm:$0xf0] }
  0xb3   :  { %524 = vmatmul.bf16.vlgmr.msra.gmra.mxu2 %v290_v58  ;;  %537 = vmatmul.bf16.vlgmr.msra.gmra.mxu3 %v291_v59  ;;  %v256_v18 = vadd.f32 %v255_v11, %v3961_v62  ;;  %v269_v9 = vadd.f32 %v268_v12, %v3963_v63  ;;  %v3575_v62 = vld [vmem:[#allocation6 + $0x10c] sm:$0xf0]  ;;  %v3572_v63 = vld [vmem:[#allocation6 + $0xfc] sm:$0xf]  ;;  %v2681_v58 = vor.u32 %v3563_v53, %v2680_v52  ;;  %v2632_v11 = vld [vmem:[#allocation6 + $0x38] sm:$0xf] }
  0xb4   :  { %1188 = vmatpush.bf16.msra.mxu0 %v2777_v6  ;;  %1214 = vmatpush.bf16.msra.mxu2 %v2781_v7  ;;  %v2729_v38 = vor.u32 %v3575_v62, %v2728_v28  ;;  %v2733_v39 = vor.u32 %v3572_v63, %v2730_v31  ;;  %v2685_v59 = vor.u32 %v3560_v54, %v2682_v55  ;;  %v3608_v6 = vld [vmem:[#allocation6 + $0x21c] sm:$0xf]  ;;  %v3551_v12 = vld [vmem:[#allocation6 + $0x4c] sm:$0xf0]  ;;  %v2610_v28 = vld [vmem:[#allocation6 + $0x20] sm:$0xf0] }
  0xb5   :  { %v3978_v25 = vadd.f32 %v276_v4, %v256_v18  ;;  %v3980_v26 = vadd.f32 %v277_v5, %v269_v9  ;;  %1201 = vmatpush.bf16.msra.mxu1 %v2969_v17  ;;  %1227 = vmatpush.bf16.msra.mxu3 %v2973_v19  ;;  %v2661_v3 = vor.u32 %v3554_v0, %v2658_v2  ;;  %v2872_v4 = vld [vmem:[#allocation6 + $0x218] sm:$0xf]  ;;  %v3611_v5 = vld [vmem:[#allocation6 + $0x22c] sm:$0xf0]  ;;  %v2848_v17 = vld [vmem:[#allocation6 + $0x1e8] sm:$0xf] }
  0xb6   :  { %v2873_v7 = vor.u32 %v3611_v5, %v2872_v4  ;;  %v2877_v10 = vor.u32 %v3608_v6, %v2874_v8  ;;  %v2633_v14 = vor.u32 %v3551_v12, %v2632_v11  ;;  %v3605_v18 = vld [vmem:[#allocation6 + $0x1fc] sm:$0xf0]  ;;  %v3602_v9 = vld [vmem:[#allocation6 + $0x1ec] sm:$0xf]  ;;  %v2824_v63 = vld [vmem:[#allocation6 + $0x1b8] sm:$0xf]  ;;  %v2789_v53 = vor.u32 %v3585_v48, %v2786_v49 }
  0xb7   :  { %v2849_v19 = vor.u32 %v3605_v18, %v2848_v17  ;;  %v3599_v31 = vld [vmem:[#allocation6 + $0x1cc] sm:$0xf0]  ;;  %v2976_v2 = vld [vmem:[#allocation6 + $0x2e0] sm:$0xf]  ;;  %v2978_v8 = vld [vmem:[#allocation6 + $0x2f8] sm:$0xf0] }
  0xb8   :  { %1189 = vmatpush.bf16.msra.mxu0 %v2753_v21  ;;  %1215 = vmatpush.bf16.msra.mxu2 %v2757_v27  ;;  %v2853_v21 = vor.u32 %v3602_v9, %v2850_v20  ;;  %v3542_v27 = vld [vmem:[#allocation6 + $0xc] sm:$0xf]  ;;  %v2760_v54 = vld [vmem:[#allocation6 + $0x130] sm:$0xf]  ;;  %v3576_v11 = vld [vmem:[#allocation6 + $0x114] sm:$0xf0] }
  0xb9   :  { %1202 = vmatpush.bf16.msra.mxu1 %v2945_v32  ;;  %1228 = vmatpush.bf16.msra.mxu3 %v2949_v33  ;;  %v2613_v62 = vor.u32 %v3542_v27, %v2610_v28  ;;  %v3596_v32 = vld [vmem:[#allocation6 + $0x1bc] sm:$0xf]  ;;  %v2825_v33 = vor.u32 %v3599_v31, %v2824_v63  ;;  %v3573_v12 = vld [vmem:[#allocation6 + $0x104] sm:$0xf]  ;;  %v2952_v17 = vld [vmem:[#allocation6 + $0x2b0] sm:$0xf] }
  0xba   :  { %v257_v41 = vpop.f32.mrf.mxu2  ;;  %v270_v42 = vpop.f32.mrf.mxu3  ;;  %v2829_v35 = vor.u32 %v3596_v32, %v2826_v34  ;;  %v3630_v18 = vld [vmem:[#allocation6 + $0x2c4] sm:$0xf0]  ;;  %v2741_v20 = vor.u32 %v3573_v12, %v2738_v13  ;;  %v2714_v63 = vld [vmem:[#allocation6 + $0xe8] sm:$0xf0]  ;;  %v2664_v49 = vld [vmem:[#allocation6 + $0x70] sm:$0xf] }
  0xbb   :  { %v324_v42 = vld [vmem:[%s4088_s7] sm:$0x3]  ;;  %v3570_v28 = vld [vmem:[#allocation6 + $0xe4] sm:$0xf0]  ;;  %v2953_v31 = vor.u32 %v3630_v18, %v2952_v17  ;;  %v2616_v13 = vld [vmem:[#allocation6 + $0x10] sm:$0xf] }
  0xbc   :  { %1190 = vmatpush.bf16.msra.mxu0 %v2729_v38  ;;  %1216 = vmatpush.bf16.msra.mxu2 %v2733_v39  ;;  %v2801_v38 = vor.u32 %v3593_v37, %v2800_v36  ;;  %v3590_v39 = vld [vmem:[#allocation6 + $0x18c] sm:$0xf]  ;;  %v326_v43 = vperm.slane %v324_v42, 0  ;;  %v2713_v34 = vor.u32 %v3570_v28, %v2712_v23  ;;  %v3624_v36 = vld [vmem:[#allocation6 + $0x294] sm:$0xf0] }
  0xbd   :  { %1203 = vmatpush.bf16.msra.mxu1 %v2921_v46  ;;  %1229 = vmatpush.bf16.msra.mxu3 %v2925_v47  ;;  %v2805_v41 = vor.u32 %v3590_v39, %v2802_v40  ;;  %v2784_v47 = vld [vmem:[#allocation6 + $0x160] sm:$0xf]  ;;  %v3621_v37 = vld [vmem:[#allocation6 + $0x284] sm:$0xf]  ;;  %v3564_v40 = vld [vmem:[#allocation6 + $0xb4] sm:$0xf0] }
  0xbe   :  { %v2785_v52 = vor.u32 %v3588_v30, %v2784_v47  ;;  %v2688_v39 = vld [vmem:[#allocation6 + $0xa0] sm:$0xf]  ;;  %v3615_v47 = vld [vmem:[#allocation6 + $0x254] sm:$0xf]  ;;  %v3044_v17 = vld [vmem:[#allocation4 + $0x170] sm:$0xf] }
  0xbf   :  { %v2689_v30 = vor.u32 %v3564_v40, %v2688_v39  ;;  %v3652_v18 = vld [vmem:[#allocation4 + $0x174] sm:$0xf0]  ;;  %v2832_v23 = vld [vmem:[#allocation6 + $0x1c0] sm:$0xf]  ;;  %v2834_v28 = vld [vmem:[#allocation6 + $0x1d8] sm:$0xf0] }
  0xc0   :  { %1191 = vmatpush.bf16.msra.mxu0 %v2705_v50  ;;  %1217 = vmatpush.bf16.msra.mxu2 %v2709_v51  ;;  %v327_v50 = vperm.slane %v324_v42, 1  ;;  %v2690_v42 = vld [vmem:[#allocation6 + $0xb8] sm:$0xf0]  ;;  %v2808_v39 = vld [vmem:[#allocation6 + $0x190] sm:$0xf] }
  0xc1   :  { %1204 = vmatpush.bf16.msra.mxu1 %v2897_v56  ;;  %1230 = vmatpush.bf16.msra.mxu3 %v2901_v57  ;;  %v3594_v40 = vld [vmem:[#allocation6 + $0x1a4] sm:$0xf0] }
  0xc4   :  { %1192 = vmatpush.bf16.msra.mxu0 %v2681_v58  ;;  %1218 = vmatpush.bf16.msra.mxu2 %v2685_v59  ;;  %v3582_v58 = vld [vmem:[#allocation6 + $0x144] sm:$0xf0]  ;;  %v3579_v59 = vld [vmem:[#allocation6 + $0x134] sm:$0xf] }
  0xc5   :  { %1205 = vmatpush.bf16.msra.mxu1 %v2873_v7  ;;  %1231 = vmatpush.bf16.msra.mxu3 %v2877_v10  ;;  %v2761_v5 = vor.u32 %v3582_v58, %v2760_v54  ;;  %v2765_v6 = vor.u32 %v3579_v59, %v2762_v60  ;;  %v3633_v7 = vld [vmem:[#allocation6 + $0x2e4] sm:$0xf]  ;;  %v2736_v10 = vld [vmem:[#allocation6 + $0x100] sm:$0xf]  ;;  %v2882_v59 = vld [vmem:[#allocation6 + $0x238] sm:$0xf0] }
  0xc6   :  { %v3609_v58 = vld [vmem:[#allocation6 + $0x224] sm:$0xf] }
  0xc8   :  { %1193 = vmatpush.bf16.msra.mxu0 %v2657_v1  ;;  %1219 = vmatpush.bf16.msra.mxu2 %v2661_v3  ;;  %v3636_v3 = vld [vmem:[#allocation6 + $0x2f4] sm:$0xf0] }
  0xc9   :  { %1206 = vmatpush.bf16.msra.mxu1 %v2849_v19  ;;  %1232 = vmatpush.bf16.msra.mxu3 %v2853_v21  ;;  %v2977_v15 = vor.u32 %v3636_v3, %v2976_v2  ;;  %v2737_v19 = vor.u32 %v3576_v11, %v2736_v10  ;;  %v3627_v21 = vld [vmem:[#allocation6 + $0x2b4] sm:$0xf]  ;;  %v3549_v2 = vld [vmem:[#allocation6 + $0x44] sm:$0xf]  ;;  %v2642_v3 = vld [vmem:[#allocation6 + $0x58] sm:$0xf0] }
  0xca   :  { %v2957_v32 = vor.u32 %v3627_v21, %v2954_v22  ;;  %v2858_v10 = vld [vmem:[#allocation6 + $0x208] sm:$0xf0]  ;;  %v2645_v12 = vor.u32 %v3549_v2, %v2642_v3  ;;  %v3651_v21 = vld [vmem:[#allocation4 + $0x174] sm:$0xf]  ;;  %v3046_v22 = vld [vmem:[#allocation4 + $0x178] sm:$0xf0] }
  0xcb   :  { %v3645_v2 = vld [vmem:[#allocation4 + $0x144] sm:$0xf]  ;;  %v3022_v3 = vld [vmem:[#allocation4 + $0x148] sm:$0xf0] }
  0xcc   :  { %1194 = vmatpush.bf16.msra.mxu0 %v2633_v14  ;;  %1220 = vmatpush.bf16.msra.mxu2 %v2637_v16  ;;  %v2981_v16 = vor.u32 %v3633_v7, %v2978_v8  ;;  %v3606_v7 = vld [vmem:[#allocation6 + $0x204] sm:$0xf0]  ;;  %v3603_v8 = vld [vmem:[#allocation6 + $0x1f4] sm:$0xf] }
  0xcd   :  { %1207 = vmatpush.bf16.msra.mxu1 %v2825_v33  ;;  %1233 = vmatpush.bf16.msra.mxu3 %v2829_v35  ;;  %v2928_v33 = vld [vmem:[#allocation6 + $0x280] sm:$0xf] }
  0xd0   :  { %1195 = vmatpush.bf16.msra.mxu0 %v2609_v24  ;;  %1221 = vmatpush.bf16.msra.mxu2 %v2613_v62  ;;  %v3567_v62 = vld [vmem:[#allocation6 + $0xd4] sm:$0xf] }
  0xd1   :  { %1208 = vmatpush.bf16.msra.mxu1 %v2801_v38  ;;  %1234 = vmatpush.bf16.msra.mxu3 %v2805_v41  ;;  %v2717_v35 = vor.u32 %v3567_v62, %v2714_v63  ;;  %v2930_v38 = vld [vmem:[#allocation6 + $0x298] sm:$0xf0]  ;;  %v3561_v41 = vld [vmem:[#allocation6 + $0xa4] sm:$0xf] }
  0xd2   :  { %v2693_v48 = vor.u32 %v3561_v41, %v2690_v42  ;;  %v3591_v41 = vld [vmem:[#allocation6 + $0x194] sm:$0xf]  ;;  %v2810_v42 = vld [vmem:[#allocation6 + $0x1a8] sm:$0xf0] }
 0x12f   :  { %v499_v44 = vpop.f32.mrf.mxu0  ;;  %v512_v45 = vpop.f32.mrf.mxu1 }
 0x130   :  { %v500_v46 = vadd.f32 %v499_v44, %v326_v43  ;;  %v2929_v43 = vor.u32 %v3624_v36, %v2928_v33  ;;  %v2933_v44 = vor.u32 %v3621_v37, %v2930_v38  ;;  %v3036_v33 = vld [vmem:[#allocation4 + $0x160] sm:$0xf]  ;;  %v3038_v38 = vld [vmem:[#allocation4 + $0x168] sm:$0xf0] }
 0x132   :  { %v513_v29 = vadd.f32 %v512_v45, %v500_v46  ;;  %v2904_v45 = vld [vmem:[#allocation6 + $0x250] sm:$0xf]  ;;  %v3618_v46 = vld [vmem:[#allocation6 + $0x264] sm:$0xf0] }
 0x134   :  { %v542_v51 = vmax.f32 %v513_v29, 0.0  ;;  %v2906_v29 = vld [vmem:[#allocation6 + $0x268] sm:$0xf0] }
 0x135   :  { %v2909_v54 = vor.u32 %v3615_v47, %v2906_v29 }
 0x136   :  { %v3985_v55 = vpack.c.bf16 %v542_v51, %v542_v51  ;;  %v525_v56 = vpop.f32.mrf.mxu2  ;;  %v538_v57 = vpop.f32.mrf.mxu3  ;;  %v3555_v51 = vld [vmem:[#allocation6 + $0x74] sm:$0xf] }
 0x137   :  { %v526_v61 = vadd.f32 %v525_v56, %v327_v50  ;;  %v501_v0 = vpop.f32.mrf.mxu0  ;;  %v514_v1 = vpop.f32.mrf.mxu1  ;;  %v3558_v50 = vld [vmem:[#allocation6 + $0x84] sm:$0xf0]  ;;  %v2880_v56 = vld [vmem:[#allocation6 + $0x220] sm:$0xf] }
 0x138   :  { %1144 = vmatmul.bf16.vlgmr.msrb.gmra.mxu0 %v3985_v55  ;;  %1170 = vmatmul.bf16.vlgmr.msrb.gmra.mxu2 %v3985_v55  ;;  %v2665_v60 = vor.u32 %v3558_v50, %v2664_v49  ;;  %v2640_v0 = vld [vmem:[#allocation6 + $0x40] sm:$0xf]  ;;  %v3552_v1 = vld [vmem:[#allocation6 + $0x54] sm:$0xf0]  ;;  %v2813_v49 = vor.u32 %v3591_v41, %v2810_v42 }
 0x139   :  { %v539_v4 = vadd.f32 %v538_v57, %v526_v61  ;;  %1240 = vmatpush.bf16.msrb.mxu0 %v2785_v52  ;;  %1266 = vmatpush.bf16.msrb.mxu2 %v2789_v53  ;;  %v2666_v52 = vld [vmem:[#allocation6 + $0x88] sm:$0xf0]  ;;  %v2905_v53 = vor.u32 %v3618_v46, %v2904_v45  ;;  %v3612_v57 = vld [vmem:[#allocation6 + $0x234] sm:$0xf0]  ;;  %v2641_v11 = vor.u32 %v3552_v1, %v2640_v0  ;;  %v3667_v45 = vld [vmem:[#allocation4 + $0x1f4] sm:$0xf] }
 0x13a   :  { %v2669_v61 = vor.u32 %v3555_v51, %v2666_v52  ;;  %v3110_v46 = vld [vmem:[#allocation4 + $0x1f8] sm:$0xf0]  ;;  %v3648_v50 = vld [vmem:[#allocation4 + $0x154] sm:$0xf0]  ;;  %v3647_v51 = vld [vmem:[#allocation4 + $0x154] sm:$0xf] }
 0x13b   :  { %v543_v14 = vmax.f32 %v539_v4, 0.0  ;;  %v2881_v4 = vor.u32 %v3612_v57, %v2880_v56  ;;  %v3030_v52 = vld [vmem:[#allocation4 + $0x158] sm:$0xf0]  ;;  %v3100_v56 = vld [vmem:[#allocation4 + $0x1e0] sm:$0xf] }
 0x13c   :  { %v3666_v57 = vld [vmem:[#allocation4 + $0x1e4] sm:$0xf0]  ;;  %v3020_v0 = vld [vmem:[#allocation4 + $0x140] sm:$0xf] }
 0x13d   :  { %v3989_v9 = vpack.c.bf16 %v543_v14, %v543_v14  ;;  %1241 = vmatpush.bf16.msrb.mxu0 %v2761_v5  ;;  %1267 = vmatpush.bf16.msrb.mxu2 %v2765_v6  ;;  %v2885_v5 = vor.u32 %v3609_v58, %v2882_v59  ;;  %v2856_v6 = vld [vmem:[#allocation6 + $0x1f0] sm:$0xf]  ;;  %v3546_v14 = vld [vmem:[#allocation6 + $0x24] sm:$0xf0]  ;;  %v3665_v58 = vld [vmem:[#allocation4 + $0x1e4] sm:$0xf] }
 0x13e   :  { %v527_v24 = vpop.f32.mrf.mxu2  ;;  %v540_v27 = vpop.f32.mrf.mxu3  ;;  %v2617_v62 = vor.u32 %v3546_v14, %v2616_v13  ;;  %v3102_v59 = vld [vmem:[#allocation4 + $0x1e8] sm:$0xf0]  ;;  %v3646_v1 = vld [vmem:[#allocation4 + $0x144] sm:$0xf0]  ;;  %v3644_v13 = vld [vmem:[#allocation4 + $0x134] sm:$0xf0] }
 0x13f   :  { %1157 = vmatmul.bf16.vlgmr.msrb.gmra.mxu1 %v3989_v9  ;;  %1183 = vmatmul.bf16.vlgmr.msrb.gmra.mxu3 %v3989_v9  ;;  %v3600_v24 = vld [vmem:[#allocation6 + $0x1d4] sm:$0xf0]  ;;  %v3597_v27 = vld [vmem:[#allocation6 + $0x1c4] sm:$0xf]  ;;  %v3643_v14 = vld [vmem:[#allocation4 + $0x134] sm:$0xf] }
 0x140   :  { %1253 = vmatpush.bf16.msrb.mxu1 %v2977_v15  ;;  %1279 = vmatpush.bf16.msrb.mxu3 %v2981_v16  ;;  %v3543_v15 = vld [vmem:[#allocation6 + $0x14] sm:$0xf]  ;;  %v2618_v16 = vld [vmem:[#allocation6 + $0x28] sm:$0xf0]  ;;  %v2833_v36 = vor.u32 %v3600_v24, %v2832_v23  ;;  %v2837_v37 = vor.u32 %v3597_v27, %v2834_v28  ;;  %v3004_v24 = vld [vmem:[#allocation4 + $0x120] sm:$0xf] }
 0x141   :  { %1242 = vmatpush.bf16.msrb.mxu0 %v2737_v19  ;;  %1268 = vmatpush.bf16.msrb.mxu2 %v2741_v20  ;;  %v2857_v19 = vor.u32 %v3606_v7, %v2856_v6  ;;  %v2861_v20 = vor.u32 %v3603_v8, %v2858_v10  ;;  %v2621_v63 = vor.u32 %v3543_v15, %v2618_v16  ;;  %v3664_v6 = vld [vmem:[#allocation4 + $0x1d4] sm:$0xf0]  ;;  %v3663_v7 = vld [vmem:[#allocation4 + $0x1d4] sm:$0xf]  ;;  %v3094_v8 = vld [vmem:[#allocation4 + $0x1d8] sm:$0xf0] }
 0x142   :  { %v3021_v10 = vor.u32 %v3646_v1, %v3020_v0  ;;  %v3014_v15 = vld [vmem:[#allocation4 + $0x138] sm:$0xf0]  ;;  %v3642_v27 = vld [vmem:[#allocation4 + $0x124] sm:$0xf0]  ;;  %v3641_v28 = vld [vmem:[#allocation4 + $0x124] sm:$0xf] }
 0x143   :  { %v3017_v23 = vor.u32 %v3643_v14, %v3014_v15  ;;  %v3052_v1 = vld [vmem:[#allocation4 + $0x180] sm:$0xf] }
 0x144   :  { %1254 = vmatpush.bf16.msrb.mxu1 %v2953_v31  ;;  %1280 = vmatpush.bf16.msrb.mxu3 %v2957_v32  ;;  %v3045_v31 = vor.u32 %v3652_v18, %v3044_v17  ;;  %v3049_v32 = vor.u32 %v3651_v21, %v3046_v22  ;;  %v3097_v17 = vor.u32 %v3663_v7, %v3094_v8  ;;  %v3084_v18 = vld [vmem:[#allocation4 + $0x1c0] sm:$0xf]  ;;  %v3086_v21 = vld [vmem:[#allocation4 + $0x1c8] sm:$0xf0]  ;;  %v289_v7 = vmax.f32 %v3980_v26, 0.0 }
 0x145   :  { %1243 = vmatpush.bf16.msrb.mxu0 %v2713_v34  ;;  %1269 = vmatpush.bf16.msrb.mxu2 %v2717_v35  ;;  %v3650_v34 = vld [vmem:[#allocation4 + $0x164] sm:$0xf0]  ;;  %v3649_v35 = vld [vmem:[#allocation4 + $0x164] sm:$0xf]  ;;  %v3285_v8 = vld [vmem:[#allocation6 + $0x450] sm:$0xf] }
 0x146   :  { %v3037_v47 = vor.u32 %v3650_v34, %v3036_v33  ;;  %v3041_v29 = vor.u32 %v3649_v35, %v3038_v38  ;;  %v3659_v33 = vld [vmem:[#allocation4 + $0x1b4] sm:$0xf]  ;;  %v3078_v34 = vld [vmem:[#allocation4 + $0x1b8] sm:$0xf0]  ;;  %v3005_v35 = vor.u32 %v3642_v27, %v3004_v24  ;;  %v3640_v38 = vld [vmem:[#allocation4 + $0x114] sm:$0xf0] }
 0x147   :  { %v3081_v42 = vor.u32 %v3659_v33, %v3078_v34  ;;  %v3261_v15 = vld [vmem:[#allocation6 + $0x420] sm:$0xf]  ;;  %v3263_v26 = vld [vmem:[#allocation6 + $0x438] sm:$0xf0]  ;;  %v3479_v24 = vld [vmem:[#allocation6 + $0x5e8] sm:$0xf0] }
 0x148   :  { %1255 = vmatpush.bf16.msrb.mxu1 %v2929_v43  ;;  %1281 = vmatpush.bf16.msrb.mxu3 %v2933_v44  ;;  %v3108_v43 = vld [vmem:[#allocation4 + $0x1f0] sm:$0xf]  ;;  %v3668_v44 = vld [vmem:[#allocation4 + $0x1f4] sm:$0xf0]  ;;  %v3453_v33 = vld [vmem:[#allocation6 + $0x5a0] sm:$0xf] }
 0x149   :  { %1196 = vmatmul.bf16.vlgmr.msra.gmra.mxu0 %v3985_v55  ;;  %1222 = vmatmul.bf16.vlgmr.msra.gmra.mxu2 %v3985_v55  ;;  %v3756_v34 = vld [vmem:[#allocation6 + $0x5b4] sm:$0xf0] }
 0x14a   :  { %1244 = vmatpush.bf16.msrb.mxu0 %v2689_v30  ;;  %1270 = vmatpush.bf16.msrb.mxu2 %v2693_v48  ;;  %v3028_v30 = vld [vmem:[#allocation4 + $0x150] sm:$0xf]  ;;  %v2809_v48 = vor.u32 %v3594_v40, %v2808_v39  ;;  %v3639_v39 = vld [vmem:[#allocation4 + $0x114] sm:$0xf]  ;;  %v2998_v40 = vld [vmem:[#allocation4 + $0x118] sm:$0xf0] }
 0x14c   :  { %1256 = vmatpush.bf16.msrb.mxu1 %v2905_v53  ;;  %1282 = vmatpush.bf16.msrb.mxu3 %v2909_v54  ;;  %v3109_v53 = vor.u32 %v3668_v44, %v3108_v43  ;;  %v3113_v54 = vor.u32 %v3667_v45, %v3110_v46  ;;  %v3068_v43 = vld [vmem:[#allocation4 + $0x1a0] sm:$0xf]  ;;  %v3658_v44 = vld [vmem:[#allocation4 + $0x1a4] sm:$0xf0]  ;;  %v3657_v45 = vld [vmem:[#allocation4 + $0x1a4] sm:$0xf] }
 0x14d   :  { %v3070_v46 = vld [vmem:[#allocation4 + $0x1a8] sm:$0xf0] }
 0x14e   :  { %1245 = vmatpush.bf16.msrb.mxu0 %v2665_v60  ;;  %1271 = vmatpush.bf16.msrb.mxu2 %v2669_v61  ;;  %v3029_v60 = vor.u32 %v3648_v50, %v3028_v30  ;;  %v3033_v61 = vor.u32 %v3647_v51, %v3030_v52  ;;  %v2988_v30 = vld [vmem:[#allocation4 + $0x100] sm:$0xf]  ;;  %v2990_v50 = vld [vmem:[#allocation4 + $0x108] sm:$0xf0]  ;;  %v3069_v51 = vor.u32 %v3658_v44, %v3068_v43  ;;  %v3215_v43 = vld [vmem:[#allocation6 + $0x3d8] sm:$0xf0] }
 0x14f   :  { %1209 = vmatmul.bf16.vlgmr.msra.gmra.mxu1 %v3989_v9  ;;  %1235 = vmatmul.bf16.vlgmr.msra.gmra.mxu3 %v3989_v9  ;;  %v3073_v52 = vor.u32 %v3657_v45, %v3070_v46  ;;  %v3429_v45 = vld [vmem:[#allocation6 + $0x570] sm:$0xf]  ;;  %v3750_v46 = vld [vmem:[#allocation6 + $0x584] sm:$0xf0] }
 0x150   :  { %1257 = vmatpush.bf16.msrb.mxu1 %v2881_v4  ;;  %1283 = vmatpush.bf16.msrb.mxu3 %v2885_v5  ;;  %v3101_v4 = vor.u32 %v3666_v57, %v3100_v56  ;;  %v3092_v5 = vld [vmem:[#allocation4 + $0x1d0] sm:$0xf]  ;;  %v3655_v56 = vld [vmem:[#allocation4 + $0x194] sm:$0xf]  ;;  %v3062_v57 = vld [vmem:[#allocation4 + $0x198] sm:$0xf0] }
 0x151   :  { %v3093_v16 = vor.u32 %v3664_v6, %v3092_v5  ;;  %v3065_v0 = vor.u32 %v3655_v56, %v3062_v57  ;;  %v3191_v56 = vld [vmem:[#allocation6 + $0x3a8] sm:$0xf0] }
 0x152   :  { %1246 = vmatpush.bf16.msrb.mxu0 %v2641_v11  ;;  %1272 = vmatpush.bf16.msrb.mxu2 %v2645_v12  ;;  %v3025_v11 = vor.u32 %v3645_v2, %v3022_v3  ;;  %v3012_v12 = vld [vmem:[#allocation4 + $0x130] sm:$0xf]  ;;  %v3654_v2 = vld [vmem:[#allocation4 + $0x184] sm:$0xf0]  ;;  %v3653_v3 = vld [vmem:[#allocation4 + $0x184] sm:$0xf] }
 0x153   :  { %v3013_v22 = vor.u32 %v3644_v13, %v3012_v12  ;;  %v3053_v5 = vor.u32 %v3654_v2, %v3052_v1  ;;  %v3287_v13 = vld [vmem:[#allocation6 + $0x468] sm:$0xf0]  ;;  %v3741_v1 = vld [vmem:[#allocation6 + $0x544] sm:$0xf]  ;;  %v3407_v2 = vld [vmem:[#allocation6 + $0x558] sm:$0xf0] }
 0x154   :  { %1258 = vmatpush.bf16.msrb.mxu1 %v2857_v19  ;;  %1284 = vmatpush.bf16.msrb.mxu3 %v2861_v20  ;;  %v3662_v19 = vld [vmem:[#allocation4 + $0x1c4] sm:$0xf0]  ;;  %v3661_v20 = vld [vmem:[#allocation4 + $0x1c4] sm:$0xf] }
 0x156   :  { %1247 = vmatpush.bf16.msrb.mxu0 %v2617_v62  ;;  %1273 = vmatpush.bf16.msrb.mxu2 %v2621_v63  ;;  %v3006_v62 = vld [vmem:[#allocation4 + $0x128] sm:$0xf0]  ;;  %v3089_v63 = vor.u32 %v3661_v20, %v3086_v21  ;;  %v3477_v20 = vld [vmem:[#allocation6 + $0x5d0] sm:$0xf]  ;;  %v3762_v21 = vld [vmem:[#allocation6 + $0x5e4] sm:$0xf0] }
 0x158   :  { %1259 = vmatpush.bf16.msrb.mxu1 %v2833_v36  ;;  %1285 = vmatpush.bf16.msrb.mxu3 %v2837_v37  ;;  %v3009_v36 = vor.u32 %v3641_v28, %v3006_v62  ;;  %v2996_v37 = vld [vmem:[#allocation4 + $0x110] sm:$0xf]  ;;  %v3702_v62 = vld [vmem:[#allocation6 + $0x404] sm:$0xf0] }
 0x159   :  { %1248 = vmatmul.bf16.vlgmr.msrb.gmra.mxu0 %v3985_v55  ;;  %1274 = vmatmul.bf16.vlgmr.msrb.gmra.mxu2 %v3985_v55  ;;  %v3105_v55 = vor.u32 %v3665_v58, %v3102_v59  ;;  %v3237_v28 = vld [vmem:[#allocation6 + $0x3f0] sm:$0xf] }
 0x15a   :  { %1559 = vmatpush.bf16.msra.mxu0 %v3045_v31  ;;  %1585 = vmatpush.bf16.msra.mxu2 %v3049_v32  ;;  %v3076_v31 = vld [vmem:[#allocation4 + $0x1b0] sm:$0xf]  ;;  %v3660_v32 = vld [vmem:[#allocation4 + $0x1b4] sm:$0xf0] }
 0x15b   :  { %v3077_v41 = vor.u32 %v3660_v32, %v3076_v31  ;;  %v3239_v31 = vld [vmem:[#allocation6 + $0x408] sm:$0xf0] }
 0x15c   :  { %1260 = vmatpush.bf16.msrb.mxu1 %v2809_v48  ;;  %1286 = vmatpush.bf16.msrb.mxu3 %v2813_v49  ;;  %v3638_v48 = vld [vmem:[#allocation4 + $0x104] sm:$0xf0]  ;;  %v3637_v49 = vld [vmem:[#allocation4 + $0x104] sm:$0xf] }
 0x15d   :  { %v2989_v58 = vor.u32 %v3638_v48, %v2988_v30  ;;  %v2993_v59 = vor.u32 %v3637_v49, %v2990_v50  ;;  %v3430_v30 = vor.u32 %v3750_v46, %v3429_v45  ;;  %v3431_v48 = vld [vmem:[#allocation6 + $0x588] sm:$0xf0]  ;;  %v3189_v50 = vld [vmem:[#allocation6 + $0x390] sm:$0xf] }
 0x15e   :  { %1560 = vmatpush.bf16.msra.mxu0 %v3037_v47  ;;  %1586 = vmatpush.bf16.msra.mxu2 %v3041_v29  ;;  %v2997_v47 = vor.u32 %v3640_v38, %v2996_v37  ;;  %v3001_v29 = vor.u32 %v3639_v39, %v2998_v40  ;;  %v3455_v37 = vld [vmem:[#allocation6 + $0x5b8] sm:$0xf0]  ;;  %v3213_v39 = vld [vmem:[#allocation6 + $0x3c0] sm:$0xf]  ;;  %v3696_v40 = vld [vmem:[#allocation6 + $0x3d4] sm:$0xf0] }
 0x15f   :  { %1261 = vmatmul.bf16.vlgmr.msrb.gmra.mxu1 %v3989_v9  ;;  %1287 = vmatmul.bf16.vlgmr.msrb.gmra.mxu3 %v3989_v9  ;;  %v3085_v9 = vor.u32 %v3662_v19, %v3084_v18  ;;  %v3715_v45 = vld [vmem:[#allocation6 + $0x46c] sm:$0xf0] }
 0x160   :  { %1572 = vmatpush.bf16.msra.mxu1 %v3109_v53  ;;  %1598 = vmatpush.bf16.msra.mxu3 %v3113_v54  ;;  %v3060_v53 = vld [vmem:[#allocation4 + $0x190] sm:$0xf]  ;;  %v3656_v54 = vld [vmem:[#allocation4 + $0x194] sm:$0xf0] }
 0x162   :  { %1561 = vmatpush.bf16.msra.mxu0 %v3029_v60  ;;  %1587 = vmatpush.bf16.msra.mxu2 %v3033_v61  ;;  %v288_v60 = vmax.f32 %v3978_v25, 0.0  ;;  %v3061_v61 = vor.u32 %v3656_v54, %v3060_v53  ;;  %v1358_v25 = vpack.c.bf16 %v289_v7, %v289_v7  ;;  %v3687_v54 = vld [vmem:[#allocation6 + $0x394] sm:$0xf]  ;;  %v3167_v7 = vld [vmem:[#allocation6 + $0x378] sm:$0xf0] }
 0x164   :  { %1573 = vmatpush.bf16.msra.mxu1 %v3101_v4  ;;  %1599 = vmatpush.bf16.msra.mxu3 %v3105_v55  ;;  %v3054_v4 = vld [vmem:[#allocation4 + $0x188] sm:$0xf0]  ;;  %v1357_v55 = vpack.c.bf16 %v288_v60, %v288_v60  ;;  %v3744_v60 = vld [vmem:[#allocation6 + $0x554] sm:$0xf0] }
 0x165   :  { %v3057_v6 = vor.u32 %v3653_v3, %v3054_v4  ;;  %v3410_v3 = vor.u32 %v3741_v1, %v3407_v2  ;;  %v3165_v4 = vld [vmem:[#allocation6 + $0x360] sm:$0xf] }
 0x166   :  { %1562 = vmatpush.bf16.msra.mxu0 %v3021_v10  ;;  %1588 = vmatpush.bf16.msra.mxu2 %v3025_v11  ;;  %v3714_v10 = vld [vmem:[#allocation6 + $0x464] sm:$0xf0]  ;;  %v3711_v11 = vld [vmem:[#allocation6 + $0x454] sm:$0xf] }
 0x167   :  { %v3286_v12 = vor.u32 %v3714_v10, %v3285_v8  ;;  %v3290_v14 = vor.u32 %v3711_v11, %v3287_v13  ;;  %v3381_v8 = vld [vmem:[#allocation6 + $0x510] sm:$0xf]  ;;  %v3738_v10 = vld [vmem:[#allocation6 + $0x524] sm:$0xf0]  ;;  %v3735_v11 = vld [vmem:[#allocation6 + $0x514] sm:$0xf] }
 0x168   :  { %1574 = vmatpush.bf16.msra.mxu1 %v3093_v16  ;;  %1600 = vmatpush.bf16.msra.mxu3 %v3097_v17  ;;  %v3708_v16 = vld [vmem:[#allocation6 + $0x434] sm:$0xf0]  ;;  %v3705_v17 = vld [vmem:[#allocation6 + $0x424] sm:$0xf] }
 0x169   :  { %v3262_v18 = vor.u32 %v3708_v16, %v3261_v15  ;;  %v3266_v19 = vor.u32 %v3705_v17, %v3263_v26  ;;  %v3382_v16 = vor.u32 %v3738_v10, %v3381_v8  ;;  %v3383_v17 = vld [vmem:[#allocation6 + $0x528] sm:$0xf0] }
 0x16a   :  { %1563 = vmatpush.bf16.msra.mxu0 %v3013_v22  ;;  %1589 = vmatpush.bf16.msra.mxu2 %v3017_v23  ;;  %v3759_v22 = vld [vmem:[#allocation6 + $0x5d4] sm:$0xf]  ;;  %v3478_v23 = vor.u32 %v3762_v21, %v3477_v20  ;;  %v3386_v26 = vor.u32 %v3735_v11, %v3383_v17  ;;  %v3678_v20 = vld [vmem:[#allocation6 + $0x344] sm:$0xf0]  ;;  %v3485_v17 = vld [vmem:[#allocation6 + $0x5d8] sm:$0xf] }
 0x16b   :  { %v3482_v27 = vor.u32 %v3759_v22, %v3479_v24 }
 0x16c   :  { %1575 = vmatpush.bf16.msra.mxu1 %v3085_v9  ;;  %1601 = vmatpush.bf16.msra.mxu3 %v3089_v63  ;;  %v3238_v9 = vor.u32 %v3702_v62, %v3237_v28  ;;  %v3699_v63 = vld [vmem:[#allocation6 + $0x3f4] sm:$0xf]  ;;  %v3143_v28 = vld [vmem:[#allocation6 + $0x348] sm:$0xf0] }
 0x16d   :  { %v3242_v32 = vor.u32 %v3699_v63, %v3239_v31  ;;  %v3732_v63 = vld [vmem:[#allocation6 + $0x4f4] sm:$0xf0]  ;;  %v3729_v31 = vld [vmem:[#allocation6 + $0x4e4] sm:$0xf] }
 0x16e   :  { %1564 = vmatpush.bf16.msra.mxu0 %v3005_v35  ;;  %1590 = vmatpush.bf16.msra.mxu2 %v3009_v36  ;;  %v3454_v35 = vor.u32 %v3756_v34, %v3453_v33  ;;  %v3753_v36 = vld [vmem:[#allocation6 + $0x5a4] sm:$0xf] }
 0x16f   :  { %v3458_v38 = vor.u32 %v3753_v36, %v3455_v37  ;;  %v3359_v36 = vld [vmem:[#allocation6 + $0x4f8] sm:$0xf0] }
 0x170   :  { %1576 = vmatpush.bf16.msra.mxu1 %v3077_v41  ;;  %1602 = vmatpush.bf16.msra.mxu3 %v3081_v42  ;;  %v3214_v41 = vor.u32 %v3696_v40, %v3213_v39  ;;  %v3693_v42 = vld [vmem:[#allocation6 + $0x3c4] sm:$0xf]  ;;  %v3362_v37 = vor.u32 %v3729_v31, %v3359_v36  ;;  %v3672_v39 = vld [vmem:[#allocation6 + $0x314] sm:$0xf0]  ;;  %v3247_v31 = vld [vmem:[#allocation6 + $0x410] sm:$0xf0] }
 0x171   :  { %v3218_v44 = vor.u32 %v3693_v42, %v3215_v43  ;;  %v3669_v40 = vld [vmem:[#allocation6 + $0x304] sm:$0xf]  ;;  %v3119_v43 = vld [vmem:[#allocation6 + $0x318] sm:$0xf0] }
 0x172   :  { %1565 = vmatpush.bf16.msra.mxu0 %v2997_v47  ;;  %1591 = vmatpush.bf16.msra.mxu2 %v3001_v29  ;;  %v3747_v47 = vld [vmem:[#allocation6 + $0x574] sm:$0xf]  ;;  %v4006_v29 = vld [vmem:[%s4090_s9] sm:$0x3f] }
 0x173   :  { %v3434_v49 = vor.u32 %v3747_v47, %v3431_v48  ;;  %v644_v57 = vperm.slane %v4006_v29, 0  ;;  %v645_v22 = vperm.slane %v4006_v29, 1  ;;  %v3122_v47 = vor.u32 %v3669_v40, %v3119_v43  ;;  %v3712_v48 = vld [vmem:[#allocation6 + $0x45c] sm:$0xf]  ;;  %v3463_v40 = vld [vmem:[#allocation6 + $0x5c0] sm:$0xf0] }
 0x174   :  { %1577 = vmatpush.bf16.msra.mxu1 %v3069_v51  ;;  %1603 = vmatpush.bf16.msra.mxu3 %v3073_v52  ;;  %v3690_v51 = vld [vmem:[#allocation6 + $0x3a4] sm:$0xf0]  ;;  %v647_v2 = vperm.slane %v4006_v29, 3 }
 0x175   :  { %v3190_v53 = vor.u32 %v3690_v51, %v3189_v50  ;;  %v3333_v50 = vld [vmem:[#allocation6 + $0x4b0] sm:$0xf] }
 0x176   :  { %1566 = vmatpush.bf16.msra.mxu0 %v2989_v58  ;;  %1592 = vmatpush.bf16.msra.mxu2 %v2993_v59  ;;  %v3194_v58 = vor.u32 %v3687_v54, %v3191_v56  ;;  %v3405_v59 = vld [vmem:[#allocation6 + $0x540] sm:$0xf]  ;;  %v3726_v54 = vld [vmem:[#allocation6 + $0x4c4] sm:$0xf0]  ;;  %v3723_v56 = vld [vmem:[#allocation6 + $0x4b4] sm:$0xf] }
 0x178   :  { %1578 = vmatpush.bf16.msra.mxu1 %v3061_v61  ;;  %1604 = vmatpush.bf16.msra.mxu3 %v3065_v0  ;;  %v4012_v61 = vld [vmem:[%s4091_s10] sm:$0x77]  ;;  %v3406_v0 = vor.u32 %v3744_v60, %v3405_v59  ;;  %v646_v59 = vperm.slane %v4006_v29, 2  ;;  %v3334_v60 = vor.u32 %v3726_v54, %v3333_v50  ;;  %v3751_v50 = vld [vmem:[#allocation6 + $0x58c] sm:$0xf0] }
 0x179   :  { %1567 = vmatmul.bf16.vlgmr.msra.gmra.mxu0 %v1357_v55  ;;  %1593 = vmatmul.bf16.vlgmr.msra.gmra.mxu2 %v1357_v55  ;;  %v3684_v55 = vld [vmem:[#allocation6 + $0x374] sm:$0xf0]  ;;  %v1302_v15 = vperm.slane %v4012_v61, 4 }
 0x17a   :  { %2207 = vmatpush.bf16.msrb.mxu0 %v3286_v12  ;;  %2233 = vmatpush.bf16.msrb.mxu2 %v3290_v14  ;;  %v1301_v14 = vperm.slane %v4012_v61, 0 }
 0x17b   :  { %v1306_v34 = vperm.slane %v1302_v15, 0 }
 0x17c   :  { %1579 = vmatpush.bf16.msra.mxu1 %v3053_v5  ;;  %1605 = vmatpush.bf16.msra.mxu3 %v3057_v6  ;;  %v3681_v5 = vld [vmem:[#allocation6 + $0x364] sm:$0xf]  ;;  %v3166_v6 = vor.u32 %v3684_v55, %v3165_v4  ;;  %v1305_v33 = vperm.slane %v1301_v14, 0  ;;  %v3709_v4 = vld [vmem:[#allocation6 + $0x43c] sm:$0xf0] }
 0x17d   :  { %v3311_v14 = vld [vmem:[#allocation6 + $0x498] sm:$0xf0] }
 0x17e   :  { %2208 = vmatpush.bf16.msrb.mxu0 %v3262_v18  ;;  %2234 = vmatpush.bf16.msrb.mxu2 %v3266_v19  ;;  %v3141_v19 = vld [vmem:[#allocation6 + $0x330] sm:$0xf] }
 0x17f   :  { %1580 = vmatmul.bf16.vlgmr.msra.gmra.mxu1 %v1358_v25  ;;  %1606 = vmatmul.bf16.vlgmr.msra.gmra.mxu3 %v1358_v25  ;;  %v3170_v25 = vor.u32 %v3681_v5, %v3167_v7  ;;  %v3142_v24 = vor.u32 %v3678_v20, %v3141_v19  ;;  %v3271_v7 = vld [vmem:[#allocation6 + $0x440] sm:$0xf0] }
 0x180   :  { %2220 = vmatpush.bf16.msrb.mxu1 %v3478_v23  ;;  %2246 = vmatpush.bf16.msrb.mxu3 %v3482_v27  ;;  %v3675_v27 = vld [vmem:[#allocation6 + $0x334] sm:$0xf] }
 0x181   :  { %v3146_v62 = vor.u32 %v3675_v27, %v3143_v28  ;;  %v1319_v27 = vperm.slane %v4012_v61, 1  ;;  %v1320_v28 = vperm.slane %v4012_v61, 5 }
 0x182   :  { %2209 = vmatpush.bf16.msrb.mxu0 %v3238_v9  ;;  %2235 = vmatpush.bf16.msrb.mxu2 %v3242_v32  ;;  %v3357_v9 = vld [vmem:[#allocation6 + $0x4e0] sm:$0xf] }
 0x184   :  { %2221 = vmatpush.bf16.msrb.mxu1 %v3454_v35  ;;  %2247 = vmatpush.bf16.msrb.mxu3 %v3458_v38  ;;  %v3358_v35 = vor.u32 %v3732_v63, %v3357_v9  ;;  %v3117_v38 = vld [vmem:[#allocation6 + $0x300] sm:$0xf]  ;;  %v3700_v63 = vld [vmem:[#allocation6 + $0x3fc] sm:$0xf] }
 0x185   :  { %v3118_v42 = vor.u32 %v3672_v39, %v3117_v38 }
 0x186   :  { %2210 = vmatpush.bf16.msrb.mxu0 %v3214_v41  ;;  %2236 = vmatpush.bf16.msrb.mxu2 %v3218_v44  ;;  %v3293_v44 = vld [vmem:[#allocation6 + $0x458] sm:$0xf] }
 0x188   :  { %2222 = vmatpush.bf16.msrb.mxu1 %v3430_v30  ;;  %2248 = vmatpush.bf16.msrb.mxu3 %v3434_v49  ;;  %v3294_v30 = vor.u32 %v3715_v45, %v3293_v44  ;;  %v3295_v49 = vld [vmem:[#allocation6 + $0x470] sm:$0xf0]  ;;  %v3694_v45 = vld [vmem:[#allocation6 + $0x3cc] sm:$0xf] }
 0x18a   :  { %2211 = vmatpush.bf16.msrb.mxu0 %v3190_v53  ;;  %2237 = vmatpush.bf16.msrb.mxu2 %v3194_v58  ;;  %v3298_v53 = vor.u32 %v3712_v48, %v3295_v49 }
 0x18c   :  { %2223 = vmatpush.bf16.msrb.mxu1 %v3406_v0  ;;  %2249 = vmatpush.bf16.msrb.mxu3 %v3410_v3  ;;  %v3269_v3 = vld [vmem:[#allocation6 + $0x428] sm:$0xf] }
 0x18d   :  { %v3270_v5 = vor.u32 %v3709_v4, %v3269_v3  ;;  %v1324_v3 = vperm.slane %v1320_v28, 1 }
 0x18e   :  { %2212 = vmatpush.bf16.msrb.mxu0 %v3166_v6  ;;  %2238 = vmatpush.bf16.msrb.mxu2 %v3170_v25  ;;  %v3706_v6 = vld [vmem:[#allocation6 + $0x42c] sm:$0xf]  ;;  %v3309_v25 = vld [vmem:[#allocation6 + $0x480] sm:$0xf] }
 0x18f   :  { %v3274_v11 = vor.u32 %v3706_v6, %v3271_v7  ;;  %v3413_v7 = vld [vmem:[#allocation6 + $0x548] sm:$0xf] }
 0x190   :  { %2224 = vmatpush.bf16.msrb.mxu1 %v3382_v16  ;;  %2250 = vmatpush.bf16.msrb.mxu3 %v3386_v26  ;;  %v3760_v26 = vld [vmem:[#allocation6 + $0x5dc] sm:$0xf] }
 0x192   :  { %2213 = vmatpush.bf16.msrb.mxu0 %v3142_v24  ;;  %2239 = vmatpush.bf16.msrb.mxu2 %v3146_v62 }
 0x194   :  { %2225 = vmatpush.bf16.msrb.mxu1 %v3358_v35  ;;  %2251 = vmatpush.bf16.msrb.mxu3 %v3362_v37  ;;  %v3754_v35 = vld [vmem:[#allocation6 + $0x5ac] sm:$0xf] }
 0x195   :  { %v3466_v43 = vor.u32 %v3754_v35, %v3463_v40  ;;  %v3733_v40 = vld [vmem:[#allocation6 + $0x4fc] sm:$0xf0] }
 0x196   :  { %2214 = vmatpush.bf16.msrb.mxu0 %v3118_v42  ;;  %2240 = vmatpush.bf16.msrb.mxu2 %v3122_v47  ;;  %v3697_v42 = vld [vmem:[#allocation6 + $0x3dc] sm:$0xf0]  ;;  %v3437_v47 = vld [vmem:[#allocation6 + $0x578] sm:$0xf] }
 0x198   :  { %2226 = vmatpush.bf16.msrb.mxu1 %v3334_v60 }
 0x19a   :  { %2259 = vmatpush.bf16.msra.mxu0 %v3294_v30  ;;  %2285 = vmatpush.bf16.msra.mxu2 %v3298_v53  ;;  %v3438_v53 = vor.u32 %v3751_v50, %v3437_v47  ;;  %v3125_v47 = vld [vmem:[#allocation6 + $0x308] sm:$0xf]  ;;  %v649_v50 = vperm.slane %v4006_v29, 5 }
 0x19e   :  { %2260 = vmatpush.bf16.msra.mxu0 %v3270_v5  ;;  %2286 = vmatpush.bf16.msra.mxu2 %v3274_v11 }
 0x1b5   :  { %v1145_v52 = vpop.f32.mrf.mxu0 }
 0x1b6   :  { %v1146_v12 = vadd.f32 %v1145_v52, %v644_v57  ;;  %v3335_v57 = vld [vmem:[#allocation6 + $0x4c8] sm:$0xf0] }
 0x1b7   :  { %v3338_v0 = vor.u32 %v3723_v56, %v3335_v57  ;;  %v3197_v57 = vld [vmem:[#allocation6 + $0x398] sm:$0xf] }
 0x1b9   :  { %2252 = vmatpush.bf16.msrb.mxu3 %v3338_v0  ;;  %v1323_v0 = vperm.slane %v1319_v27, 1  ;;  %v3736_v27 = vld [vmem:[#allocation6 + $0x51c] sm:$0xf] }
 0x1bb   :  { %v1171_v13 = vpop.f32.mrf.mxu2 }
 0x1bc   :  { %v1158_v18 = vpop.f32.mrf.mxu1  ;;  %v1172_v41 = vadd.f32 %v1171_v13, %v645_v22  ;;  %v3717_v13 = vld [vmem:[#allocation6 + $0x484] sm:$0xf]  ;;  %v3245_v22 = vld [vmem:[#allocation6 + $0x3f8] sm:$0xf] }
 0x1bd   :  { %v1159_v21 = vadd.f32 %v1158_v18, %v1146_v12  ;;  %v1147_v23 = vpop.f32.mrf.mxu0  ;;  %v3720_v12 = vld [vmem:[#allocation6 + $0x494] sm:$0xf0]  ;;  %v3314_v16 = vor.u32 %v3717_v13, %v3311_v14  ;;  %v3763_v18 = vld [vmem:[#allocation6 + $0x5ec] sm:$0xf0]  ;;  %v3173_v13 = vld [vmem:[#allocation6 + $0x368] sm:$0xf] }
 0x1be   :  { %v3310_v15 = vor.u32 %v3720_v12, %v3309_v25  ;;  %v3486_v20 = vor.u32 %v3763_v18, %v3485_v17  ;;  %v3703_v23 = vld [vmem:[#allocation6 + $0x40c] sm:$0xf0]  ;;  %v3745_v25 = vld [vmem:[#allocation6 + $0x55c] sm:$0xf0]  ;;  %v3415_v12 = vld [vmem:[#allocation6 + $0x560] sm:$0xf0] }
 0x1bf   :  { %v1292_v32 = vmax.f32 %v1159_v21, 0.0  ;;  %v3487_v21 = vld [vmem:[#allocation6 + $0x5f0] sm:$0xf0]  ;;  %2253 = vmatpush.bf16.msrb.mxu3 %v3314_v16  ;;  %v3246_v9 = vor.u32 %v3703_v23, %v3245_v22  ;;  %v3685_v14 = vld [vmem:[#allocation6 + $0x37c] sm:$0xf0] }
 0x1c0   :  { %2227 = vmatpush.bf16.msrb.mxu1 %v3310_v15  ;;  %v3490_v62 = vor.u32 %v3760_v26, %v3487_v21  ;;  %v3174_v17 = vor.u32 %v3685_v14, %v3173_v13  ;;  %v3682_v18 = vld [vmem:[#allocation6 + $0x36c] sm:$0xf]  ;;  %v3175_v26 = vld [vmem:[#allocation6 + $0x380] sm:$0xf0]  ;;  %v3389_v23 = vld [vmem:[#allocation6 + $0x518] sm:$0xf] }
 0x1c1   :  { %v1307_v8 = vmul.f32 %v1305_v33, %v1292_v32  ;;  %v3250_v32 = vor.u32 %v3700_v63, %v3247_v31  ;;  %v3461_v33 = vld [vmem:[#allocation6 + $0x5a8] sm:$0xf]  ;;  %2261 = vmatpush.bf16.msra.mxu0 %v3246_v9  ;;  %v3149_v31 = vld [vmem:[#allocation6 + $0x338] sm:$0xf] }
 0x1c2   :  { %v1184_v46 = vpop.f32.mrf.mxu3 }
 0x1c3   :  { %v1185_v51 = vadd.f32 %v1184_v46, %v1172_v41  ;;  %v1173_v52 = vpop.f32.mrf.mxu2  ;;  %2298 = vmatpush.bf16.msra.mxu3 %v3490_v62  ;;  %v3221_v41 = vld [vmem:[#allocation6 + $0x3c8] sm:$0xf]  ;;  %2287 = vmatpush.bf16.msra.mxu2 %v3250_v32  ;;  %v3223_v46 = vld [vmem:[#allocation6 + $0x3e0] sm:$0xf0]  ;;  %v3391_v62 = vld [vmem:[#allocation6 + $0x530] sm:$0xf0] }
 0x1c4   :  { %v1160_v58 = vpop.f32.mrf.mxu1  ;;  %2272 = vmatpush.bf16.msra.mxu1 %v3486_v20  ;;  %v3222_v44 = vor.u32 %v3697_v42, %v3221_v41  ;;  %v3226_v49 = vor.u32 %v3694_v45, %v3223_v46  ;;  %v3439_v52 = vld [vmem:[#allocation6 + $0x590] sm:$0xf0]  ;;  %v3178_v20 = vor.u32 %v3682_v18, %v3175_v26  ;;  %v3394_v63 = vor.u32 %v3736_v27, %v3391_v62  ;;  %v3679_v32 = vld [vmem:[#allocation6 + $0x34c] sm:$0xf0]  ;;  %v3730_v41 = vld [vmem:[#allocation6 + $0x4ec] sm:$0xf] }
 0x1c5   :  { %v1293_v1 = vmax.f32 %v1185_v51, 0.0  ;;  %v3748_v51 = vld [vmem:[#allocation6 + $0x57c] sm:$0xf]  ;;  %v3691_v58 = vld [vmem:[#allocation6 + $0x3ac] sm:$0xf0] }
 0x1c6   :  { %v1197_v55 = vpop.f32.mrf.mxu0  ;;  %2262 = vmatpush.bf16.msra.mxu0 %v3222_v44  ;;  %v3442_v54 = vor.u32 %v3748_v51, %v3439_v52  ;;  %v3198_v4 = vor.u32 %v3691_v58, %v3197_v57  ;;  %v3367_v44 = vld [vmem:[#allocation6 + $0x500] sm:$0xf0]  ;;  %v3341_v57 = vld [vmem:[#allocation6 + $0x4b8] sm:$0xf] }
 0x1c7   :  { %v1308_v10 = vmul.f32 %v1306_v34, %v1293_v1  ;;  %v3757_v34 = vld [vmem:[#allocation6 + $0x5bc] sm:$0xf0]  ;;  %v1198_v36 = vadd.f32 %v1197_v55, %v646_v59  ;;  %2299 = vmatpush.bf16.msra.mxu3 %v3466_v43  ;;  %2288 = vmatpush.bf16.msra.mxu2 %v3226_v49  ;;  %v3688_v59 = vld [vmem:[#allocation6 + $0x39c] sm:$0xf]  ;;  %v3199_v55 = vld [vmem:[#allocation6 + $0x3b0] sm:$0xf0]  ;;  %v3370_v46 = vor.u32 %v3730_v41, %v3367_v44 }
 0x1c8   :  { %v3462_v39 = vor.u32 %v3757_v34, %v3461_v33  ;;  %v3202_v6 = vor.u32 %v3688_v59, %v3199_v55  ;;  %v3676_v33 = vld [vmem:[#allocation6 + $0x33c] sm:$0xf]  ;;  %v648_v34 = vperm.slane %v4006_v29, 4  ;;  %v1338_v59 = vperm.slane %v4012_v61, 6  ;;  %v3279_v41 = vld [vmem:[#allocation6 + $0x448] sm:$0xf0] }
 0x1c9   :  { %v1309_v19 = vadd.f32 %v1308_v10, %v1307_v8  ;;  %v3742_v8 = vld [vmem:[#allocation6 + $0x54c] sm:$0xf] }
 0x1ca   :  { %v1186_v24 = vpop.f32.mrf.mxu3  ;;  %2273 = vmatpush.bf16.msra.mxu1 %v3462_v39  ;;  %2263 = vmatpush.bf16.msra.mxu0 %v3198_v4  ;;  %v3418_v16 = vor.u32 %v3742_v8, %v3415_v12  ;;  %v3365_v39 = vld [vmem:[#allocation6 + $0x4e8] sm:$0xf]  ;;  %v3319_v12 = vld [vmem:[#allocation6 + $0x4a0] sm:$0xf0] }
 0x1cb   :  { %1310 = vadd.xlane.f32.xlu0 %v1309_v19  ;;  %2300 = vmatpush.bf16.msra.mxu3 %v3442_v54  ;;  %v3739_v24 = vld [vmem:[#allocation6 + $0x52c] sm:$0xf0]  ;;  %v3366_v43 = vor.u32 %v3733_v40, %v3365_v39  ;;  %v1337_v54 = vperm.slane %v4012_v61, 2  ;;  %v3710_v39 = vld [vmem:[#allocation6 + $0x444] sm:$0xf0] }
 0x1cc   :  { %v1210_v37 = vpop.f32.mrf.mxu1  ;;  %v1223_v38 = vpop.f32.mrf.mxu2  ;;  %2289 = vmatpush.bf16.msra.mxu2 %v3202_v6  ;;  %v3390_v28 = vor.u32 %v3739_v24, %v3389_v23  ;;  %v3317_v6 = vld [vmem:[#allocation6 + $0x488] sm:$0xf]  ;;  %v3707_v40 = vld [vmem:[#allocation6 + $0x434] sm:$0xf] }
 0x1cd   :  { %v1211_v30 = vadd.f32 %v1210_v37, %v1198_v36  ;;  %v1224_v56 = vadd.f32 %v1223_v38, %v647_v2  ;;  %v3414_v2 = vor.u32 %v3745_v25, %v3413_v7  ;;  %v3150_v36 = vor.u32 %v3679_v32, %v3149_v31  ;;  %v3151_v37 = vld [vmem:[#allocation6 + $0x350] sm:$0xf0]  ;;  %v3721_v7 = vld [vmem:[#allocation6 + $0x49c] sm:$0xf0]  ;;  %v3303_v31 = vld [vmem:[#allocation6 + $0x478] sm:$0xf0] }
 0x1ce   :  { %v1199_v48 = vpop.f32.mrf.mxu0  ;;  %2274 = vmatpush.bf16.msra.mxu1 %v3438_v53  ;;  %2264 = vmatpush.bf16.msra.mxu0 %v3174_v17  ;;  %v3154_v38 = vor.u32 %v3676_v33, %v3151_v37  ;;  %v3127_v53 = vld [vmem:[#allocation6 + $0x320] sm:$0xf0]  ;;  %v3318_v61 = vor.u32 %v3721_v7, %v3317_v6  ;;  %v3695_v6 = vld [vmem:[#allocation6 + $0x3d4] sm:$0xf]  ;;  %v3231_v7 = vld [vmem:[#allocation6 + $0x3e8] sm:$0xf0] }
 0x1cf   :  { %v1294_v60 = vmax.f32 %v1211_v30, 0.0  ;;  %2301 = vmatpush.bf16.msra.mxu3 %v3418_v16  ;;  %v3673_v30 = vld [vmem:[#allocation6 + $0x31c] sm:$0xf0]  ;;  %v3670_v48 = vld [vmem:[#allocation6 + $0x30c] sm:$0xf] }
 0x1d0   :  { %2290 = vmatpush.bf16.msra.mxu2 %v3178_v20  ;;  %v3126_v52 = vor.u32 %v3673_v30, %v3125_v47  ;;  %v3495_v47 = vld [vmem:[#allocation6 + $0x5f8] sm:$0xf0] }
 0x1d1   :  { %v1325_v21 = vmul.f32 %v1323_v0, %v1294_v60  ;;  %v3727_v60 = vld [vmem:[#allocation6 + $0x4cc] sm:$0xf0]  ;;  %v3724_v0 = vld [vmem:[#allocation6 + $0x4bc] sm:$0xf] }
 0x1d2   :  { %v1236_v1 = vpop.f32.mrf.mxu3  ;;  %2275 = vmatpush.bf16.msra.mxu1 %v3414_v2  ;;  %2265 = vmatpush.bf16.msra.mxu0 %v3150_v36  ;;  %v3718_v2 = vld [vmem:[#allocation6 + $0x48c] sm:$0xf]  ;;  %v3277_v36 = vld [vmem:[#allocation6 + $0x430] sm:$0xf] }
 0x1d3   :  { %v1237_v5 = vadd.f32 %v1236_v1, %v1224_v56  ;;  %2302 = vmatpush.bf16.msra.mxu3 %v3394_v63  ;;  %v3130_v56 = vor.u32 %v3670_v48, %v3127_v53  ;;  %v3342_v1 = vor.u32 %v3727_v60, %v3341_v57  ;;  %v3322_v14 = vor.u32 %v3718_v2, %v3319_v12  ;;  %v3713_v63 = vld [vmem:[#allocation6 + $0x464] sm:$0xf]  ;;  %v3447_v12 = vld [vmem:[#allocation6 + $0x598] sm:$0xf0] }
 0x1d4   :  { %v1212_v10 = vpop.f32.mrf.mxu1  ;;  %v1225_v11 = vpop.f32.mrf.mxu2  ;;  %2291 = vmatpush.bf16.msra.mxu2 %v3154_v38  ;;  %v3749_v2 = vld [vmem:[#allocation6 + $0x584] sm:$0xf] }
 0x1d5   :  { %v1295_v15 = vmax.f32 %v1237_v5, 0.0  ;;  %v1341_v5 = vperm.slane %v1337_v54, 2  ;;  %v1342_v11 = vperm.slane %v1338_v59, 2  ;;  %v3701_v54 = vld [vmem:[#allocation6 + $0x404] sm:$0xf] }
 0x1d6   :  { %v1249_v19 = vpop.f32.mrf.mxu0  ;;  %2276 = vmatpush.bf16.msra.mxu1 %v3390_v28  ;;  %2266 = vmatpush.bf16.msra.mxu0 %v3126_v52  ;;  %v3301_v28 = vld [vmem:[#allocation6 + $0x460] sm:$0xf]  ;;  %v3704_v52 = vld [vmem:[#allocation6 + $0x414] sm:$0xf0]  ;;  %v3469_v59 = vld [vmem:[#allocation6 + $0x5b0] sm:$0xf] }
 0x1d7   :  { %v1326_v22 = vmul.f32 %v1324_v3, %v1295_v15  ;;  %v1250_v49 = vadd.f32 %v1249_v19, %v648_v34  ;;  %2303 = vmatpush.bf16.msra.mxu3 %v3370_v46  ;;  %v3343_v3 = vld [vmem:[#allocation6 + $0x4d0] sm:$0xf0]  ;;  %v2985_v19 = vld [vmem:[%s4088_s7 + $0x2] sm:$0x3]  ;;  %v3761_v46 = vld [vmem:[#allocation6 + $0x5e4] sm:$0xf] }
 0x1d8   :  { %2292 = vmatpush.bf16.msra.mxu2 %v3130_v56  ;;  %v3346_v29 = vor.u32 %v3724_v0, %v3343_v3  ;;  %v1396_v24 = vperm.slane %v2985_v19, 1  ;;  %v3255_v56 = vld [vmem:[#allocation6 + $0x418] sm:$0xf0]  ;;  %v3758_v0 = vld [vmem:[#allocation6 + $0x5c4] sm:$0xf0] }
 0x1d9   :  { %v1327_v9 = vadd.f32 %v1326_v22, %v1325_v21  ;;  %v1395_v21 = vperm.slane %v2985_v19, 0  ;;  %v3471_v3 = vld [vmem:[#allocation6 + $0x5c8] sm:$0xf0]  ;;  %v3450_v19 = vor.u32 %v3749_v2, %v3447_v12  ;;  %v95_v12 = vld [vmem:[%s4083_s2] sm:$0xff] }
 0x1da   :  { %v1238_v35 = vpop.f32.mrf.mxu3  ;;  %2277 = vmatpush.bf16.msra.mxu1 %v3366_v43  ;;  %v3493_v43 = vld [vmem:[#allocation6 + $0x5e0] sm:$0xf]  ;;  %vm1332_vm3 = vcmp.eq.s32.totalorder %v95_v12, 1  ;;  %vm1314_vm4 = vcmp.eq.s32.totalorder %v95_v12, 0  ;;  %vm1350_vm5 = vcmp.eq.s32.totalorder %v95_v12, 2 }
 0x1db   :  { %1328 = vadd.xlane.f32.xlu0 %v1327_v9  ;;  %2304 = vmatpush.bf16.msra.mxu3 %v3346_v29  ;;  %v3716_v9 = vld [vmem:[#allocation6 + $0x474] sm:$0xf0]  ;;  %v3306_v35 = vor.u32 %v3713_v63, %v3303_v31  ;;  %v3258_v29 = vor.u32 %v3701_v54, %v3255_v56  ;;  %v3183_v63 = vld [vmem:[#allocation6 + $0x388] sm:$0xf0] }
 0x1dc   :  { %v1275_v42 = vpop.f32.mrf.mxu2  ;;  %v1262_v45 = vpop.f32.mrf.mxu1  ;;  %v3302_v34 = vor.u32 %v3716_v9, %v3301_v28  ;;  %v3181_v28 = vld [vmem:[#allocation6 + $0x370] sm:$0xf]  ;;  %v3683_v9 = vld [vmem:[#allocation6 + $0x374] sm:$0xf]  ;;  %v3135_v54 = vld [vmem:[#allocation6 + $0x328] sm:$0xf0] }
 0x1dd   :  { %v1263_v58 = vadd.f32 %v1262_v45, %v1250_v49  ;;  %v1276_v4 = vadd.f32 %v1275_v42, %v649_v50  ;;  %v3764_v45 = vld [vmem:[#allocation6 + $0x5f4] sm:$0xf0]  ;;  %v3278_v49 = vor.u32 %v3710_v39, %v3277_v36  ;;  %v3282_v50 = vor.u32 %v3707_v40, %v3279_v41  ;;  %v3399_v36 = vld [vmem:[#allocation6 + $0x538] sm:$0xf0]  ;;  %v3157_v40 = vld [vmem:[#allocation6 + $0x340] sm:$0xf] }
 0x1de   :  { %v1251_v51 = vpop.f32.mrf.mxu0  ;;  %2278 = vmatpush.bf16.msra.mxu1 %v3342_v1  ;;  %v3494_v57 = vor.u32 %v3764_v45, %v3493_v43  ;;  %v3755_v1 = vld [vmem:[#allocation6 + $0x5b4] sm:$0xf]  ;;  %v3186_v39 = vor.u32 %v3683_v9, %v3183_v63  ;;  %v3680_v41 = vld [vmem:[#allocation6 + $0x354] sm:$0xf0]  ;;  %v3159_v43 = vld [vmem:[#allocation6 + $0x358] sm:$0xf0] }
 0x1df   :  { %v1296_v25 = vmax.f32 %v1263_v58, 0.0  ;;  %2305 = vmatpush.bf16.msra.mxu3 %v3322_v14  ;;  %v3253_v51 = vld [vmem:[#allocation6 + $0x400] sm:$0xf]  ;;  %v3498_v58 = vor.u32 %v3761_v46, %v3495_v47  ;;  %v3234_v14 = vor.u32 %v3695_v6, %v3231_v7  ;;  %v3373_v46 = vld [vmem:[#allocation6 + $0x4f0] sm:$0xf] }
 0x1e0   :  { %v3734_v47 = vld [vmem:[#allocation6 + $0x504] sm:$0xf0]  ;;  %v3719_v7 = vld [vmem:[#allocation6 + $0x494] sm:$0xf] }
 0x1e1   :  { %v1343_v16 = vmul.f32 %v1341_v5, %v1296_v25  ;;  %v3698_v5 = vld [vmem:[#allocation6 + $0x3e4] sm:$0xf0]  ;;  %v3374_v56 = vor.u32 %v3734_v47, %v3373_v46 }
 0x1e2   :  { %v1288_v55 = vpop.f32.mrf.mxu3  ;;  %2279 = vmatpush.bf16.msra.mxu1 %v3318_v61  ;;  %v3752_v61 = vld [vmem:[#allocation6 + $0x594] sm:$0xf0]  ;;  %v3722_v6 = vld [vmem:[#allocation6 + $0x4a4] sm:$0xf0] }
 0x1e3   :  { %v1289_v8 = vadd.f32 %v1288_v55, %v1276_v4  ;;  %v3254_v4 = vor.u32 %v3704_v52, %v3253_v51  ;;  %v3229_v55 = vld [vmem:[#allocation6 + $0x3d0] sm:$0xf]  ;;  %v3674_v52 = vld [vmem:[#allocation6 + $0x324] sm:$0xf0] }
 0x1e4   :  { %v1277_v10 = vpop.f32.mrf.mxu2  ;;  %v1264_v13 = vpop.f32.mrf.mxu1  ;;  %v3133_v51 = vld [vmem:[#allocation6 + $0x310] sm:$0xf] }
 0x1e5   :  { %v1297_v15 = vmax.f32 %v1289_v8, 0.0  ;;  %v3470_v8 = vor.u32 %v3758_v0, %v3469_v59  ;;  %v3474_v10 = vor.u32 %v3755_v1, %v3471_v3  ;;  %v3230_v13 = vor.u32 %v3698_v5, %v3229_v55  ;;  %v3728_v59 = vld [vmem:[#allocation6 + $0x4d4] sm:$0xf0]  ;;  %v3725_v0 = vld [vmem:[#allocation6 + $0x4c4] sm:$0xf] }
 0x1e6   :  { %v3351_v1 = vld [vmem:[#allocation6 + $0x4d8] sm:$0xf0]  ;;  %v3134_v3 = vor.u32 %v3674_v52, %v3133_v51  ;;  %v3325_v5 = vld [vmem:[#allocation6 + $0x490] sm:$0xf] }
 0x1e7   :  { %v1344_v17 = vmul.f32 %v1342_v11, %v1297_v15  ;;  %v3445_v11 = vld [vmem:[#allocation6 + $0x580] sm:$0xf]  ;;  %v3354_v55 = vor.u32 %v3725_v0, %v3351_v1 }
 0x1e8   :  { %v3205_v15 = vld [vmem:[#allocation6 + $0x3a0] sm:$0xf] }
 0x1e9   :  { %v1345_v18 = vadd.f32 %v1344_v17, %v1343_v16  ;;  %v3692_v16 = vld [vmem:[#allocation6 + $0x3b4] sm:$0xf0]  ;;  %v3689_v17 = vld [vmem:[#allocation6 + $0x3a4] sm:$0xf] }
 0x1ea   :  { %v1290_v26 = vpop.f32.mrf.mxu3 }
 0x1eb   :  { %1346 = vadd.xlane.f32.xlu2 %v1345_v18  ;;  %v3207_v18 = vld [vmem:[#allocation6 + $0x3b8] sm:$0xf0]  ;;  %v3446_v26 = vor.u32 %v3752_v61, %v3445_v11  ;;  %v1299_v61 = vld [vmem:[%s4092_s11] sm:$0x7] }
 0x1ec   :  { %v1330_v2 = vperm.slane %v1299_v61, 1 }
 0x1f6   :  { %v1568_v20 = vpop.f32.mrf.mxu0 }
 0x1f7   :  { %v1569_v22 = vadd.f32 %v1568_v20, %v1395_v21  ;;  %v3421_v20 = vld [vmem:[#allocation6 + $0x550] sm:$0xf]  ;;  %v3746_v21 = vld [vmem:[#allocation6 + $0x564] sm:$0xf0] }
 0x1f8   :  { %v3422_v31 = vor.u32 %v3746_v21, %v3421_v20 }
 0x1fc   :  { %v1581_v23 = vpop.f32.mrf.mxu1  ;;  %v1594_v27 = vpop.f32.mrf.mxu2 }
 0x1fd   :  { %v1582_v62 = vadd.f32 %v1581_v23, %v1569_v22  ;;  %v1595_v38 = vadd.f32 %v1594_v27, %v1396_v24  ;;  %v3743_v22 = vld [vmem:[#allocation6 + $0x554] sm:$0xf]  ;;  %v3423_v23 = vld [vmem:[#allocation6 + $0x568] sm:$0xf0]  ;;  %v3206_v24 = vor.u32 %v3692_v16, %v3205_v15  ;;  %v3210_v27 = vor.u32 %v3689_v17, %v3207_v18 }
 0x1fe   :  { %v1570_v32 = vpop.f32.mrf.mxu0  ;;  %v3860_v15 = vmov 0.0  }
 0x1ff   :  { %v1611_v33 = vmax.f32 %v1582_v62, 0.0  ;;  %v3686_v62 = vld [vmem:[#allocation6 + $0x384] sm:$0xf0]  ;;  %v3426_v32 = vor.u32 %v3743_v22, %v3423_v23  ;;  %v4052_v16 = vsel %vm1332_vm3, 1.0, %v3860_v15  ;;  %v4054_v18 = vsel %vm1314_vm4, 1.0, %v3860_v15 }
 0x201   :  { %v4030_v37 = vpack.c.bf16 %v1611_v33, %v1611_v33  ;;  %v3397_v33 = vld [vmem:[#allocation6 + $0x520] sm:$0xf] }
 0x202   :  { %v1607_v42 = vpop.f32.mrf.mxu3 }
 0x203   :  { %v1608_v44 = vadd.f32 %v1607_v42, %v1595_v38  ;;  %2215 = vmatmul.bf16.vlgmr.msrb.gmra.mxu0 %v4030_v37  ;;  %2241 = vmatmul.bf16.vlgmr.msrb.gmra.mxu2 %v4030_v37  ;;  %v3182_v38 = vor.u32 %v3686_v62, %v3181_v28  ;;  %v3677_v42 = vld [vmem:[#allocation6 + $0x344] sm:$0xf]  ;;  %v3114_v28 = vld [vmem:[%s4090_s9 + $0x6] sm:$0x3f] }
 0x204   :  { %v1583_v30 = vpop.f32.mrf.mxu1  ;;  %v1596_v48 = vpop.f32.mrf.mxu2  ;;  %2311 = vmatpush.bf16.msrb.mxu0 %v3302_v34  ;;  %2337 = vmatpush.bf16.msrb.mxu2 %v3306_v35  ;;  %v3740_v34 = vld [vmem:[#allocation6 + $0x534] sm:$0xf0]  ;;  %v3737_v35 = vld [vmem:[#allocation6 + $0x524] sm:$0xf]  ;;  %v1715_v9 = vperm.slane %v3114_v28, 0  ;;  %v1717_v51 = vperm.slane %v3114_v28, 2 }
 0x205   :  { %v1612_v53 = vmax.f32 %v1608_v44, 0.0  ;;  %v3398_v44 = vor.u32 %v3740_v34, %v3397_v33  ;;  %v3402_v45 = vor.u32 %v3737_v35, %v3399_v36  ;;  %v3731_v30 = vld [vmem:[#allocation6 + $0x4f4] sm:$0xf]  ;;  %v3375_v48 = vld [vmem:[#allocation6 + $0x508] sm:$0xf0]  ;;  %v1716_v34 = vperm.slane %v3114_v28, 1 }
 0x206   :  { %v1719_v12 = vperm.slane %v3114_v28, 4 }
 0x207   :  { %v4034_v60 = vpack.c.bf16 %v1612_v53, %v1612_v53  ;;  %v3671_v53 = vld [vmem:[#allocation6 + $0x314] sm:$0xf] }
 0x208   :  { %2312 = vmatpush.bf16.msrb.mxu0 %v3278_v49  ;;  %2338 = vmatpush.bf16.msrb.mxu2 %v3282_v50  ;;  %v3158_v49 = vor.u32 %v3680_v41, %v3157_v40  ;;  %v3162_v50 = vor.u32 %v3677_v42, %v3159_v43 }
 0x209   :  { %2228 = vmatmul.bf16.vlgmr.msrb.gmra.mxu1 %v4034_v60  ;;  %2254 = vmatmul.bf16.vlgmr.msrb.gmra.mxu3 %v4034_v60 }
 0x20a   :  { %v1609_v25 = vpop.f32.mrf.mxu3  ;;  %2324 = vmatpush.bf16.msrb.mxu1 %v3494_v57  ;;  %2350 = vmatpush.bf16.msrb.mxu3 %v3498_v58  ;;  %v3378_v57 = vor.u32 %v3731_v30, %v3375_v48  ;;  %v3349_v58 = vld [vmem:[#allocation6 + $0x4c0] sm:$0xf] }
 0x20b   :  { %v3327_v25 = vld [vmem:[#allocation6 + $0x4a8] sm:$0xf0] }
 0x20c   :  { %2313 = vmatpush.bf16.msrb.mxu0 %v3254_v4  ;;  %2339 = vmatpush.bf16.msrb.mxu2 %v3258_v29  ;;  %v3138_v4 = vor.u32 %v3671_v53, %v3135_v54  ;;  %v3350_v29 = vor.u32 %v3728_v59, %v3349_v58  ;;  %v1718_v58 = vperm.slane %v3114_v28, 3 }
 0x20e   :  { %2325 = vmatpush.bf16.msrb.mxu1 %v3470_v8  ;;  %2351 = vmatpush.bf16.msrb.mxu3 %v3474_v10  ;;  %v3326_v8 = vor.u32 %v3722_v6, %v3325_v5  ;;  %v3330_v10 = vor.u32 %v3719_v7, %v3327_v25 }
 0x210   :  { %2314 = vmatpush.bf16.msrb.mxu0 %v3230_v13  ;;  %2340 = vmatpush.bf16.msrb.mxu2 %v3234_v14  ;;  %v1312_v14 = vperm.slane %v1299_v61, 0 }
 0x212   :  { %2326 = vmatpush.bf16.msrb.mxu1 %v3446_v26  ;;  %2352 = vmatpush.bf16.msrb.mxu3 %v3450_v19  ;;  %v4057_v19 = vsel %vm1350_vm5, 1.0, %v3860_v15 }
 0x213   :  { %2267 = vmatmul.bf16.vlgmr.msra.gmra.mxu0 %v4030_v37  ;;  %2293 = vmatmul.bf16.vlgmr.msra.gmra.mxu2 %v4030_v37 }
 0x214   :  { %2315 = vmatpush.bf16.msrb.mxu0 %v3206_v24  ;;  %2341 = vmatpush.bf16.msrb.mxu2 %v3210_v27 }
 0x216   :  { %2327 = vmatpush.bf16.msrb.mxu1 %v3422_v31  ;;  %2353 = vmatpush.bf16.msrb.mxu3 %v3426_v32  ;;  %v3499_v32 = vld [vmem:[%s4091_s10 + $0x8] sm:$0x77] }
 0x217   :  { %v2389_v1 = vperm.slane %v3499_v32, 1 }
 0x218   :  { %2316 = vmatpush.bf16.msrb.mxu0 %v3182_v38  ;;  %2342 = vmatpush.bf16.msrb.mxu2 %v3186_v39  ;;  %v2374_v38 = vperm.slane %v3499_v32, 0  ;;  %v2375_v39 = vperm.slane %v3499_v32, 4 }
 0x219   :  { %2280 = vmatmul.bf16.vlgmr.msra.gmra.mxu1 %v4034_v60  ;;  %2306 = vmatmul.bf16.vlgmr.msra.gmra.mxu3 %v4034_v60  ;;  %v2393_v5 = vperm.slane %v2389_v1, 1 }
 0x21a   :  { %2328 = vmatpush.bf16.msrb.mxu1 %v3398_v44  ;;  %2354 = vmatpush.bf16.msrb.mxu3 %v3402_v45  ;;  %v2378_v44 = vperm.slane %v2374_v38, 0  ;;  %v2379_v45 = vperm.slane %v2375_v39, 0 }
 0x21c   :  { %2317 = vmatpush.bf16.msrb.mxu0 %v3158_v49  ;;  %2343 = vmatpush.bf16.msrb.mxu2 %v3162_v50 }
 0x21e   :  { %2329 = vmatpush.bf16.msrb.mxu1 %v3374_v56  ;;  %2355 = vmatpush.bf16.msrb.mxu3 %v3378_v57 }
 0x220   :  { %2318 = vmatpush.bf16.msrb.mxu0 %v3134_v3  ;;  %2344 = vmatpush.bf16.msrb.mxu2 %v3138_v4  ;;  %v2390_v3 = vperm.slane %v3499_v32, 5 }
 0x222   :  { %2330 = vmatpush.bf16.msrb.mxu1 %v3350_v29  ;;  %2356 = vmatpush.bf16.msrb.mxu3 %v3354_v55  ;;  %v2394_v7 = vperm.slane %v2390_v3, 1 }
 0x223   :  { %2319 = vmatmul.bf16.vlgmr.msrb.gmra.mxu0 %v4030_v37  ;;  %2345 = vmatmul.bf16.vlgmr.msrb.gmra.mxu2 %v4030_v37 }
 0x226   :  { %2331 = vmatpush.bf16.msrb.mxu1 %v3326_v8  ;;  %2357 = vmatpush.bf16.msrb.mxu3 %v3330_v10 }
 0x229   :  { %2332 = vmatmul.bf16.vlgmr.msrb.gmra.mxu1 %v4034_v60  ;;  %2358 = vmatmul.bf16.vlgmr.msrb.gmra.mxu3 %v4034_v60  ;;  %v1348_v60 = vperm.slane %v1299_v61, 2 }
 0x23e   :  { %v1311_v11 = vpop.xlane.xlu0 %1310 }
 0x23f   :  { %v1313_v17 = vadd.f32 %v1312_v14, %v1311_v11 }
 0x241   :  { %v1317_v21 = vmul.f32 %v4054_v18, %v1313_v17 }
 0x24e   :  { %v1329_v13 = vpop.xlane.xlu0 %1328 }
 0x24f   :  { %v1331_v37 = vadd.f32 %v1330_v2, %v1329_v13 }
 0x251   :  { %v1335_v26 = vmul.f32 %v4052_v16, %v1331_v37 }
 0x253   :  { %v1336_v23 = vadd.f32 %v1335_v26, %v1317_v21  ;;  %v2404_v21 = vperm.slane %v3499_v32, 2 }
 0x25e   :  { %v1347_v20 = vpop.xlane.xlu2 %1346 }
 0x25f   :  { %v1349_v22 = vadd.f32 %v1348_v60, %v1347_v20  ;;  %v1720_v60 = vperm.slane %v3114_v28, 5  ;;  %v3500_v28 = vld [vmem:[%s4092_s11 + $0x4] sm:$0x7] }
 0x261   :  { %v1353_v24 = vmul.f32 %v4057_v19, %v1349_v22  ;;  %v2405_v22 = vperm.slane %v3499_v32, 6  ;;  %v2400_v32 = vperm.slane %v3500_v28, 1 }
 0x263   :  { %v1354_v27 = vadd.f32 %v1353_v24, %v1336_v23 }
 0x265   :  { %1356 = vst.msk [vmem:[%s4093_s12] sm:$0xff] %vm1355_vm6, %v1354_v27 }
 0x280   :  { %v2216_v62 = vpop.f32.mrf.mxu0 }
 0x281   :  { %v2217_v33 = vadd.f32 %v2216_v62, %v1715_v9  ;;  %v2408_v62 = vperm.slane %v2404_v21, 2 }
 0x286   :  { %v2229_v63 = vpop.f32.mrf.mxu1  ;;  %v2242_v31 = vpop.f32.mrf.mxu2 }
 0x287   :  { %v2230_v36 = vadd.f32 %v2229_v63, %v2217_v33  ;;  %v2243_v40 = vadd.f32 %v2242_v31, %v1716_v34  ;;  %v2409_v63 = vperm.slane %v2405_v22, 2 }
 0x288   :  { %v2218_v35 = vpop.f32.mrf.mxu0 }
 0x289   :  { %v2363_v42 = vmax.f32 %v2230_v36, 0.0 }
 0x28b   :  { %v2380_v49 = vmul.f32 %v2378_v44, %v2363_v42  ;;  %v2385_v42 = vperm.slane %v3500_v28, 0 }
 0x28c   :  { %v2255_v41 = vpop.f32.mrf.mxu3 }
 0x28d   :  { %v2256_v43 = vadd.f32 %v2255_v41, %v2243_v40 }
 0x28e   :  { %v2231_v46 = vpop.f32.mrf.mxu1  ;;  %v2244_v47 = vpop.f32.mrf.mxu2 }
 0x28f   :  { %v2364_v30 = vmax.f32 %v2256_v43, 0.0 }
 0x290   :  { %v2268_v48 = vpop.f32.mrf.mxu0 }
 0x291   :  { %v2381_v50 = vmul.f32 %v2379_v45, %v2364_v30  ;;  %v2269_v57 = vadd.f32 %v2268_v48, %v1717_v51  ;;  %v2415_v45 = vperm.slane %v3500_v28, 2 }
 0x293   :  { %v2382_v52 = vadd.f32 %v2381_v50, %v2380_v49 }
 0x294   :  { %v2257_v53 = vpop.f32.mrf.mxu3 }
 0x295   :  { %2383 = vadd.xlane.f32.xlu1 %v2382_v52 }
 0x296   :  { %v2281_v54 = vpop.f32.mrf.mxu1  ;;  %v2294_v56 = vpop.f32.mrf.mxu2 }
 0x297   :  { %v2282_v0 = vadd.f32 %v2281_v54, %v2269_v57  ;;  %v2295_v4 = vadd.f32 %v2294_v56, %v1718_v58 }
 0x298   :  { %v2270_v59 = vpop.f32.mrf.mxu0 }
 0x299   :  { %v2365_v55 = vmax.f32 %v2282_v0, 0.0 }
 0x29b   :  { %v2395_v61 = vmul.f32 %v2393_v5, %v2365_v55 }
 0x29c   :  { %v2307_v29 = vpop.f32.mrf.mxu3 }
 0x29d   :  { %v2308_v6 = vadd.f32 %v2307_v29, %v2295_v4 }
 0x29e   :  { %v2283_v25 = vpop.f32.mrf.mxu1  ;;  %v2296_v8 = vpop.f32.mrf.mxu2 }
 0x29f   :  { %v2366_v10 = vmax.f32 %v2308_v6, 0.0 }
 0x2a0   :  { %v2320_v11 = vpop.f32.mrf.mxu0 }
 0x2a1   :  { %v2396_v2 = vmul.f32 %v2394_v7, %v2366_v10  ;;  %v2321_v17 = vadd.f32 %v2320_v11, %v1719_v12 }
 0x2a3   :  { %v2397_v13 = vadd.f32 %v2396_v2, %v2395_v61 }
 0x2a4   :  { %v2309_v14 = vpop.f32.mrf.mxu3 }
 0x2a5   :  { %2398 = vadd.xlane.f32.xlu1 %v2397_v13 }
 0x2a6   :  { %v2333_v37 = vpop.f32.mrf.mxu1  ;;  %v2346_v15 = vpop.f32.mrf.mxu2 }
 0x2a7   :  { %v2334_v20 = vadd.f32 %v2333_v37, %v2321_v17  ;;  %v2347_v23 = vadd.f32 %v2346_v15, %v1720_v60 }
 0x2a8   :  { %v2322_v26 = vpop.f32.mrf.mxu0 }
 0x2a9   :  { %v2367_v27 = vmax.f32 %v2334_v20, 0.0 }
 0x2ab   :  { %v2410_v35 = vmul.f32 %v2408_v62, %v2367_v27 }
 0x2ac   :  { %v2359_v24 = vpop.f32.mrf.mxu3 }
 0x2ad   :  { %v2360_v9 = vadd.f32 %v2359_v24, %v2347_v23 }
 0x2ae   :  { %v2335_v31 = vpop.f32.mrf.mxu1  ;;  %v2348_v33 = vpop.f32.mrf.mxu2 }
 0x2af   :  { %v2368_v34 = vmax.f32 %v2360_v9, 0.0 }
 0x2b1   :  { %v2411_v36 = vmul.f32 %v2409_v63, %v2368_v34 }
 0x2b3   :  { %v2412_v38 = vadd.f32 %v2411_v36, %v2410_v35 }
 0x2b4   :  { %v2361_v39 = vpop.f32.mrf.mxu3 }
 0x2b5   :  { %2413 = vadd.xlane.f32.xlu2 %v2412_v38 }
 0x308   :  { %v2384_v40 = vpop.xlane.xlu1 %2383 }
 0x309   :  { %v2386_v44 = vadd.f32 %v2385_v42, %v2384_v40 }
 0x30b   :  { %v2387_v30 = vmul.f32 %v4054_v18, %v2386_v44 }
 0x318   :  { %v2399_v41 = vpop.xlane.xlu1 %2398 }
 0x319   :  { %v2401_v43 = vadd.f32 %v2400_v32, %v2399_v41 }
 0x31b   :  { %v2402_v46 = vmul.f32 %v4052_v16, %v2401_v43 }
 0x31d   :  { %v2403_v49 = vadd.f32 %v2402_v46, %v2387_v30 }
 0x328   :  { %v2414_v47 = vpop.xlane.xlu2 %2413 }
 0x329   :  { %v2416_v48 = vadd.f32 %v2415_v45, %v2414_v47 }
 0x32b   :  { %v2417_v50 = vmul.f32 %v4057_v19, %v2416_v48 }
 0x32d   :  { %v2418_v51 = vadd.f32 %v2417_v50, %v2403_v49 }
 0x32f   :  { %2419 = vst.msk [vmem:[%s4094_s13] sm:$0xff] %vm1355_vm6, %v2418_v51 }
 0x330   :  { %2428 = vsyncpa [#allocation3], 1 }
 0x331   :  { %2429 = vsyncpa [#allocation5], 1 }

</bundles_post_ra>
